<compile_context>
chip_gen: v7x
topology: tpu7x:2x2x1
jax: 0.10.0
libtpu: 0.0.40
codegen_flags: <defaults>
</compile_context>

<pallas_src>
import math

import jax
import jax.numpy as jnp
from jax import lax
from jax.experimental import pallas as pl
from jax.experimental.pallas import tpu as pltpu


# ---------------------------------------------------------------------------
# Kernel factory
# ---------------------------------------------------------------------------
def _make_sae_kernel(use_scratch, mxu_dtype):
    """Returns the kernel body.  use_scratch=False accumulates the decoder
    directly into the (f32, resident-over-j) decoded output block."""

    def compute(x_ref, we_ref, be_ref, wd_ref, bd_ref, enc_ref, dec_ref, acc_ref):
        # x_ref:  (tile_b, in_p)
        # we_ref: (tile_h, in_p)   be_ref: (1, tile_h)     (PyTorch layout)
        # wd_ref: (in_p, tile_h)   bd_ref: (1, in_p)       (PyTorch layout)
        # enc_ref:(tile_b, tile_h) dec_ref:(tile_b, in_p)
        # acc_ref:(tile_b, in_p) f32 (scratch, or dec_ref itself when f32 out)
        j = pl.program_id(1)
        nj = pl.num_programs(1)

        x = x_ref[...]
        we = we_ref[...]
        wd = wd_ref[...]
        if mxu_dtype is not None:
            x = x.astype(mxu_dtype)
            we = we.astype(mxu_dtype)
            wd = wd.astype(mxu_dtype)

        # Encoder tile: sigmoid(x @ W_enc_tile.T + b_enc_tile).  MXU "NT",
        # f32 accumulation; sigmoid stays f32 (EUP/VPU).
        h = lax.dot_general(
            x, we,
            dimension_numbers=(((1,), (1,)), ((), ())),
            preferred_element_type=jnp.float32,
        ) + be_ref[...].astype(jnp.float32)
        enc = jax.nn.sigmoid(h)
        enc_ref[...] = enc.astype(enc_ref.dtype)

        # Decoder partial product for this hidden tile: enc_tile @ W_dec[:, h_tile].T
        part = lax.dot_general(
            enc.astype(wd.dtype), wd,
            dimension_numbers=(((1,), (1,)), ((), ())),
            preferred_element_type=jnp.float32,
        )

        @pl.when(j == 0)
        def _():
            acc_ref[...] = part

        @pl.when(j > 0)
        def _():
            acc_ref[...] += part

        @pl.when(j == nj - 1)
        def _():
            d = acc_ref[...] + bd_ref[...].astype(jnp.float32)
            dec_ref[...] = jnp.tanh(d).astype(dec_ref.dtype)

    if use_scratch:
        return compute

    def direct(x_ref, we_ref, be_ref, wd_ref, bd_ref, enc_ref, dec_ref):
        # f32 output: dec_ref doubles as the accumulator (resident over j).
        compute(x_ref, we_ref, be_ref, wd_ref, bd_ref, enc_ref, dec_ref, dec_ref)

    return direct


# ---------------------------------------------------------------------------
# Sizing helpers
# ---------------------------------------------------------------------------
def _round_up(x, m):
    return ((x + m - 1) // m) * m


def _vmem_capacity_bytes():
    """Per-core VMEM capacity; conservative 64 MiB (v7x) if the query fails."""
    try:
        cap = int(getattr(pltpu.get_tpu_info(), "vmem_capacity_bytes", 0))
        if cap > 0:
            return cap
    except Exception:
        pass
    return 64 << 20


def _vmem_bytes(tb, th, in_p, dsize, resident_weights):
    """Working-set estimate, incl. double-buffering and live f32 temporaries."""
    wbuf = 1 if resident_weights else 2          # Buffered(1) when index constant
    x_b = 2 * tb * in_p * dsize
    we_b = wbuf * th * in_p * dsize
    be_b = wbuf * 8 * th * dsize
    wd_b = wbuf * in_p * th * dsize
    bd_b = 8 * in_p * dsize                      # always constant -> single buffer
    enc_b = 2 * tb * th * dsize
    dec_b = 2 * tb * in_p * dsize
    acc_b = tb * in_p * 4                        # decoder accumulator (scratch/out)
    tmp_b = 2 * tb * th * 4                      # live f32 h / enc temporaries
    return x_b + we_b + be_b + wd_b + bd_b + enc_b + dec_b + acc_b + tmp_b


def _choose_tiles(B_p, in_p, h_p, dsize, budget, pack):
    """Prefer weight residency (tile_h == h_p), then the largest batch tile
    that fits, keeping >= 2 batch tiles when possible (megacore sharding)."""
    tb_cands = [t for t in (2048, 1024, 512, 256, 128, 64, 32, 16, 8)
                if pack <= t <= B_p and B_p % t == 0]
    if B_p not in tb_cands:
        tb_cands.append(B_p)
    tb_cands.sort(reverse=True)
    multi = [t for t in tb_cands if B_p // t >= 2]
    tb_order = multi + [t for t in tb_cands if t not in multi]

    th_cands = [h_p] + [t for t in (4096, 2048, 1024, 512, 256, 128)
                        if t < h_p and h_p % t == 0]

    for th in th_cands:                          # residency first
        resident = th == h_p
        for tb in tb_order:                      # then biggest batch tile
            if _vmem_bytes(tb, th, in_p, dsize, resident) <= budget:
                return tb, th
    return pack, (128 if h_p >= 128 else h_p)    # minimal fallback


def _pad2(a, rows, cols):
    pr, pc = rows - a.shape[0], cols - a.shape[1]
    if pr == 0 and pc == 0:
        return a
    return jnp.pad(a, ((0, pr), (0, pc)))


# ---------------------------------------------------------------------------
# Wrapper
# ---------------------------------------------------------------------------
def sparse_autoencoder_forward(x, w_enc, b_enc, w_dec, b_dec, *,
                               tile_b=None, tile_h=None, mxu_dtype=None):
    """x: (B, in_dims). Weights in PyTorch convention:
       w_enc: (h_dims, in_dims), b_enc: (h_dims,),
       w_dec: (in_dims, h_dims), b_dec: (in_dims,).
       mxu_dtype: optional narrower dtype (e.g. jnp.bfloat16) to feed the MXU;
       accumulation stays f32.  Returns (encoded (B,h_dims), decoded (B,in_dims))."""
    B, in_dims = x.shape
    h_dims, in_w = w_enc.shape
    assert in_w == in_dims and w_dec.shape == (in_dims, h_dims)
    assert b_enc.shape == (h_dims,) and b_dec.shape == (in_dims,)

    out_dtype = x.dtype
    dsize = jnp.dtype(x.dtype).itemsize
    pack = max(8, 32 // dsize)                   # sublane pack: 8 f32 / 16 bf16 / 32 i8

    # Lane-dense padding: last dims to multiples of 128, batch to the pack.
    in_p = _round_up(in_dims, 128)
    h_p = _round_up(h_dims, 128)
    B_p = _round_up(B, pack)

    cap = _vmem_capacity_bytes()
    budget = (cap * 3) // 4 - (4 << 20)          # headroom for Mosaic internals

    if tile_b is None or tile_h is None:
        auto_tb, auto_th = _choose_tiles(B_p, in_p, h_p, dsize, budget, pack)
        tile_b = auto_tb if tile_b is None else tile_b
        tile_h = auto_th if tile_h is None else tile_h
    if h_p % tile_h:
        raise ValueError(f"tile_h={tile_h} must divide padded h_dims={h_p}")
    B_p = _round_up(B_p, tile_b)

    resident = tile_h == h_p                     # weights fetched once for whole grid

    # Pad operands (cheap / no-op when already aligned).  Padded hidden units
    # produce sigmoid(0)=0.5 in the padded encoder columns, but the matching
    # decoder weight columns are zero, so decoded stays exact; padding is
    # sliced away from both outputs.
    xp = _pad2(x, B_p, in_p)
    wep = _pad2(w_enc, h_p, in_p)
    wdp = _pad2(w_dec, in_p, h_p)
    be2 = jnp.pad(b_enc, (0, h_p - h_dims)).reshape(1, h_p)
    bd2 = jnp.pad(b_dec, (0, in_p - in_dims)).reshape(1, in_p)

    grid = (B_p // tile_b, h_p // tile_h)
    use_scratch = jnp.dtype(out_dtype) != jnp.float32
    kernel = _make_sae_kernel(use_scratch, mxu_dtype)
    scratch = [pltpu.VMEM((tile_b, in_p), jnp.float32)] if use_scratch else []

    est_single = _vmem_bytes(tile_b, tile_h, in_p, dsize, resident)
    est_double = _vmem_bytes(tile_b, tile_h, in_p, dsize, False)
    # Always set the limit (v5e default scoped VMEM is only 16 MiB) and keep it
    # safely below the physical per-core capacity (v7x: 64 MiB).
    vmem_limit = max(32 << 20, int(est_double * 1.3), int(est_single * 1.25))
    vmem_limit = min(vmem_limit, cap - (8 << 20))

    cost = pl.CostEstimate(
        flops=4 * B_p * in_p * h_p,                       # encoder + decoder matmuls
        transcendentals=B_p * (h_p + in_p),               # sigmoid + tanh
        bytes_accessed=int((xp.size + wep.size + wdp.size + h_p + in_p
                            + B_p * h_p + B_p * in_p) * dsize),
    )

    out_shape = (jax.ShapeDtypeStruct((B_p, h_p), out_dtype),
                 jax.ShapeDtypeStruct((B_p, in_p), out_dtype))
    out_specs = [
        pl.BlockSpec((tile_b, tile_h), lambda i, j: (i, j)),   # encoded
        pl.BlockSpec((tile_b, in_p), lambda i, j: (i, 0)),     # decoded (resident over j)
    ]

    def make_in_specs(allow_single_buffer):
        def spec(shape, imap, single):
            if single and allow_single_buffer and hasattr(pl, "Buffered"):
                return pl.BlockSpec(shape, imap, pipeline_mode=pl.Buffered(1))
            return pl.BlockSpec(shape, imap)
        return [
            spec((tile_b, in_p), lambda i, j: (i, 0), False),      # x tile
            spec((tile_h, in_p), lambda i, j: (j, 0), resident),   # W_enc (torch layout)
            spec((1, tile_h), lambda i, j: (0, j), resident),      # b_enc tile
            spec((in_p, tile_h), lambda i, j: (0, j), resident),   # W_dec (torch layout)
            spec((1, in_p), lambda i, j: (0, 0), True),            # b_dec (constant)
        ]

    def run(allow_single_buffer):
        call = pl.pallas_call(
            kernel,
            out_shape=out_shape,
            grid_spec=pltpu.PrefetchScalarGridSpec(
                num_scalar_prefetch=0,
                grid=grid,
                in_specs=make_in_specs(allow_single_buffer),
                out_specs=out_specs,
                scratch_shapes=scratch,
            ),
            compiler_params=pltpu.CompilerParams(
                dimension_semantics=("parallel", "arbitrary"),
                vmem_limit_bytes=vmem_limit,
            ),
            cost_estimate=cost,
        )
        return call(xp, wep, be2, wdp, bd2)

    try:
        enc, dec = run(True)
    except Exception:
        # Fallback if Buffered(1) pipeline mode is unsupported in this jax build.
        enc, dec = run(False)

    if (B_p, h_p) != (B, h_dims):
        enc = enc[:B, :h_dims]
    if (B_p, in_p) != (B, in_dims):
        dec = dec[:B, :in_dims]
    return enc, dec


# ---------------------------------------------------------------------------
# Init helper + self-test
# ---------------------------------------------------------------------------
def xavier_uniform(key, fan_out, fan_in, dtype=jnp.float32):
    # matches torch.nn.init.xavier_uniform_ for a (fan_out, fan_in) weight
    bound = math.sqrt(6.0 / (fan_in + fan_out))
    return jax.random.uniform(key, (fan_out, fan_in), dtype=dtype,
                              minval=-bound, maxval=bound)


if __name__ == "__main__":
    # Small lane-dense shapes: batch=64, in_dims=128, h_dims=256.
    B, IN_DIMS, H_DIMS = 64, 128, 256

    key = jax.random.PRNGKey(0)
    k_x, k_we, k_wd = jax.random.split(key, 3)

    x = jax.random.normal(k_x, (B, IN_DIMS), dtype=jnp.float32)

    # Parameter init mirroring __init__ (xavier_uniform weights, zero bias)
    w_enc = xavier_uniform(k_we, H_DIMS, IN_DIMS)   # (h_dims, in_dims)
    b_enc = jnp.zeros((H_DIMS,), jnp.float32)
    w_dec = xavier_uniform(k_wd, IN_DIMS, H_DIMS)   # (in_dims, h_dims)
    b_dec = jnp.zeros((IN_DIMS,), jnp.float32)

    # Reference in plain JAX
    enc_ref = jax.nn.sigmoid(x @ w_enc.T + b_enc)
    dec_ref = jnp.tanh(enc_ref @ w_dec.T + b_dec)

    # 1) Auto-tiled path: resident weights (tile_h == h_dims), direct f32 accumulation.
    encoded, decoded = sparse_autoencoder_forward(x, w_enc, b_enc, w_dec, b_dec)
    jax.block_until_ready((encoded, decoded))
    assert encoded.shape == (B, H_DIMS) and decoded.shape == (B, IN_DIMS)
    assert jnp.allclose(encoded, enc_ref, atol=1e-5, rtol=1e-5)
    assert jnp.allclose(decoded, dec_ref, atol=1e-5, rtol=1e-5)

    # 2) Streamed-weights tiling: exercises the hidden-axis reduction/accumulator.
    enc2, dec2 = sparse_autoencoder_forward(x, w_enc, b_enc, w_dec, b_dec,
                                            tile_b=32, tile_h=128)
    jax.block_until_ready((enc2, dec2))
    assert jnp.allclose(enc2, enc_ref, atol=1e-5, rtol=1e-5)
    assert jnp.allclose(dec2, dec_ref, atol=1e-5, rtol=1e-5)

    # 3) bf16 MXU feeding (perf option) — f32 accumulation, looser tolerance.
    enc3, dec3 = sparse_autoencoder_forward(x, w_enc, b_enc, w_dec, b_dec,
                                            mxu_dtype=jnp.bfloat16)
    jax.block_until_ready((enc3, dec3))
    assert jnp.allclose(enc3, enc_ref, atol=3e-2, rtol=3e-2)
    assert jnp.allclose(dec3, dec_ref, atol=3e-2, rtol=3e-2)

    # TODO(synk): sparsity_penalty / loss_function are training-time loss helpers,
    # not part of forward(); implement in plain JAX if needed.
    print("KERNEL_OK")
</pallas_src>

<mosaic_0001>
module attributes {stable_mosaic.version = 11 : i64} {
  func.func @direct(%arg0: i32, %arg1: i32, %arg2: memref<32x128xf32, #tpu.memory_space<vmem>>, %arg3: memref<256x128xf32, #tpu.memory_space<vmem>>, %arg4: memref<1x256xf32, #tpu.memory_space<vmem>>, %arg5: memref<128x256xf32, #tpu.memory_space<vmem>>, %arg6: memref<1x128xf32, #tpu.memory_space<vmem>>, %arg7: memref<32x256xf32, #tpu.memory_space<vmem>>, %arg8: memref<32x128xf32, #tpu.memory_space<vmem>>) attributes {dimension_semantics = [#tpu.dimension_semantics<parallel>, #tpu.dimension_semantics<arbitrary>], iteration_bounds = array<i64: 2, 1>, scalar_prefetch = 0 : i64, scratch_operands = 0 : i64, tpu.core_type = #tpu.core_type<tc>, window_params = [{transform_indices = @transform_0, window_bounds = array<i64: 32, 128>}, {pipeline_mode = #tpu.pipeline_mode<synchronous>, transform_indices = @transform_1, window_bounds = array<i64: 256, 128>}, {pipeline_mode = #tpu.pipeline_mode<synchronous>, transform_indices = @transform_2, window_bounds = array<i64: 1, 256>}, {pipeline_mode = #tpu.pipeline_mode<synchronous>, transform_indices = @transform_3, window_bounds = array<i64: 128, 256>}, {pipeline_mode = #tpu.pipeline_mode<synchronous>, transform_indices = @transform_4, window_bounds = array<i64: 1, 128>}, {transform_indices = @transform_5, window_bounds = array<i64: 32, 256>}, {transform_indices = @transform_6, window_bounds = array<i64: 32, 128>}]} {
    %c0 = arith.constant 0 : index
    %c0_0 = arith.constant 0 : index
    %0 = vector.load %arg2[%c0, %c0_0] : memref<32x128xf32, #tpu.memory_space<vmem>>, vector<32x128xf32>
    %c0_1 = arith.constant 0 : index
    %c0_2 = arith.constant 0 : index
    %1 = vector.load %arg3[%c0_1, %c0_2] : memref<256x128xf32, #tpu.memory_space<vmem>>, vector<256x128xf32>
    %c0_3 = arith.constant 0 : index
    %c0_4 = arith.constant 0 : index
    %2 = vector.load %arg5[%c0_3, %c0_4] : memref<128x256xf32, #tpu.memory_space<vmem>>, vector<128x256xf32>
    %cst = arith.constant dense<0.000000e+00> : vector<32x256xf32>
    %3 = tpu.matmul %0, %1, %cst {dimension_numbers = #tpu.dot_dimension_numbers<[1], [1], [0], [0], [0, 0, 1, 0], [], []>} : vector<32x128xf32>, vector<256x128xf32>, vector<32x256xf32> -> vector<32x256xf32>
    %c0_5 = arith.constant 0 : index
    %c0_6 = arith.constant 0 : index
    %4 = vector.load %arg4[%c0_5, %c0_6] : memref<1x256xf32, #tpu.memory_space<vmem>>, vector<1x256xf32>
    %5 = vector.broadcast %4 : vector<1x256xf32> to vector<32x256xf32>
    %6 = arith.addf %3, %5 : vector<32x256xf32>
    %7 = arith.negf %6 : vector<32x256xf32>
    %8 = math.exp %7 : vector<32x256xf32>
    %cst_7 = arith.constant 1.000000e+00 : f32
    %9 = vector.broadcast %cst_7 : f32 to vector<32x256xf32>
    %10 = arith.addf %9, %8 : vector<32x256xf32>
    %11 = arith.divf %9, %10 : vector<32x256xf32>
    %c0_8 = arith.constant 0 : index
    %c0_9 = arith.constant 0 : index
    %12 = vector.load %arg7[%c0_8, %c0_9] : memref<32x256xf32, #tpu.memory_space<vmem>>, vector<32x256xf32>
    tpu.vector_store %arg7[%c0_8, %c0_9], %11 {strides = array<i32>} : memref<32x256xf32, #tpu.memory_space<vmem>>, vector<32x256xf32>,
    %cst_10 = arith.constant dense<0.000000e+00> : vector<32x128xf32>
    %13 = tpu.matmul %11, %2, %cst_10 {dimension_numbers = #tpu.dot_dimension_numbers<[1], [1], [0], [0], [0, 0, 1, 0], [], []>} : vector<32x256xf32>, vector<128x256xf32>, vector<32x128xf32> -> vector<32x128xf32>
    %c0_i32 = arith.constant 0 : i32
    %14 = arith.cmpi eq, %arg1, %c0_i32 : i32
    %15 = arith.extui %14 : i1 to i32
    %c0_i32_11 = arith.constant 0 : i32
    %16 = arith.cmpi ne, %15, %c0_i32_11 : i32
    scf.if %16 {
      %c0_16 = arith.constant 0 : index
      %c0_17 = arith.constant 0 : index
      %23 = vector.load %arg8[%c0_16, %c0_17] : memref<32x128xf32, #tpu.memory_space<vmem>>, vector<32x128xf32>
      tpu.vector_store %arg8[%c0_16, %c0_17], %13 {strides = array<i32>} : memref<32x128xf32, #tpu.memory_space<vmem>>, vector<32x128xf32>,
    } else {
    }
    %c0_i32_12 = arith.constant 0 : i32
    %17 = arith.cmpi sgt, %arg1, %c0_i32_12 : i32
    %18 = arith.extui %17 : i1 to i32
    %c0_i32_13 = arith.constant 0 : i32
    %19 = arith.cmpi ne, %18, %c0_i32_13 : i32
    scf.if %19 {
      %c0_16 = arith.constant 0 : index
      %c0_17 = arith.constant 0 : index
      %23 = vector.load %arg8[%c0_16, %c0_17] : memref<32x128xf32, #tpu.memory_space<vmem>>, vector<32x128xf32>
      %24 = arith.addf %23, %13 : vector<32x128xf32>
      %c0_18 = arith.constant 0 : index
      %c0_19 = arith.constant 0 : index
      %25 = vector.load %arg8[%c0_18, %c0_19] : memref<32x128xf32, #tpu.memory_space<vmem>>, vector<32x128xf32>
      tpu.vector_store %arg8[%c0_18, %c0_19], %24 {strides = array<i32>} : memref<32x128xf32, #tpu.memory_space<vmem>>, vector<32x128xf32>,
    } else {
    }
    %c0_i32_14 = arith.constant 0 : i32
    %20 = arith.cmpi eq, %arg1, %c0_i32_14 : i32
    %21 = arith.extui %20 : i1 to i32
    %c0_i32_15 = arith.constant 0 : i32
    %22 = arith.cmpi ne, %21, %c0_i32_15 : i32
    scf.if %22 {
      %c0_16 = arith.constant 0 : index
      %c0_17 = arith.constant 0 : index
      %23 = vector.load %arg8[%c0_16, %c0_17] : memref<32x128xf32, #tpu.memory_space<vmem>>, vector<32x128xf32>
      %c0_18 = arith.constant 0 : index
      %c0_19 = arith.constant 0 : index
      %24 = vector.load %arg6[%c0_18, %c0_19] : memref<1x128xf32, #tpu.memory_space<vmem>>, vector<1x128xf32>
      %25 = vector.broadcast %24 : vector<1x128xf32> to vector<32x128xf32>
      %26 = arith.addf %23, %25 : vector<32x128xf32>
      %27 = math.tanh %26 : vector<32x128xf32>
      %c0_20 = arith.constant 0 : index
      %c0_21 = arith.constant 0 : index
      %28 = vector.load %arg8[%c0_20, %c0_21] : memref<32x128xf32, #tpu.memory_space<vmem>>, vector<32x128xf32>
      tpu.vector_store %arg8[%c0_20, %c0_21], %27 {strides = array<i32>} : memref<32x128xf32, #tpu.memory_space<vmem>>, vector<32x128xf32>,
    } else {
    }
    return
  }
  func.func @transform_0(%arg0: i32, %arg1: i32) -> (i32, i32) {
    %c0_i32 = arith.constant 0 : i32
    %c0_i32_0 = arith.constant 0 : i32
    return %arg0, %c0_i32 : i32, i32
  }
  func.func @transform_1(%arg0: i32, %arg1: i32) -> (i32, i32) {
    %c0_i32 = arith.constant 0 : i32
    %c0_i32_0 = arith.constant 0 : i32
    return %arg1, %c0_i32 : i32, i32
  }
  func.func @transform_2(%arg0: i32, %arg1: i32) -> (i32, i32) {
    %c0_i32 = arith.constant 0 : i32
    %c0_i32_0 = arith.constant 0 : i32
    return %c0_i32, %arg1 : i32, i32
  }
  func.func @transform_3(%arg0: i32, %arg1: i32) -> (i32, i32) {
    %c0_i32 = arith.constant 0 : i32
    %c0_i32_0 = arith.constant 0 : i32
    return %c0_i32, %arg1 : i32, i32
  }
  func.func @transform_4(%arg0: i32, %arg1: i32) -> (i32, i32) {
    %c0_i32 = arith.constant 0 : i32
    %c0_i32_0 = arith.constant 0 : i32
    %c0_i32_1 = arith.constant 0 : i32
    return %c0_i32, %c0_i32_0 : i32, i32
  }
  func.func @transform_5(%arg0: i32, %arg1: i32) -> (i32, i32) {
    %c0_i32 = arith.constant 0 : i32
    return %arg0, %arg1 : i32, i32
  }
  func.func @transform_6(%arg0: i32, %arg1: i32) -> (i32, i32) {
    %c0_i32 = arith.constant 0 : i32
    %c0_i32_0 = arith.constant 0 : i32
    return %arg0, %c0_i32 : i32, i32
  }
}

module attributes {stable_mosaic.version = 11 : i64} {
  func.func @direct(%arg0: i32, %arg1: i32, %arg2: memref<32x128xf32, #tpu.memory_space<vmem>>, %arg3: memref<256x128xf32, #tpu.memory_space<vmem>>, %arg4: memref<1x256xf32, #tpu.memory_space<vmem>>, %arg5: memref<128x256xf32, #tpu.memory_space<vmem>>, %arg6: memref<1x128xf32, #tpu.memory_space<vmem>>, %arg7: memref<32x256xf32, #tpu.memory_space<vmem>>, %arg8: memref<32x128xf32, #tpu.memory_space<vmem>>) attributes {dimension_semantics = [#tpu.dimension_semantics<parallel>, #tpu.dimension_semantics<arbitrary>], iteration_bounds = array<i64: 2, 1>, scalar_prefetch = 0 : i64, scratch_operands = 0 : i64, tpu.core_type = #tpu.core_type<tc>, window_params = [{transform_indices = @transform_0, window_bounds = array<i64: 32, 128>}, {transform_indices = @transform_1, window_bounds = array<i64: 256, 128>}, {transform_indices = @transform_2, window_bounds = array<i64: 1, 256>}, {transform_indices = @transform_3, window_bounds = array<i64: 128, 256>}, {pipeline_mode = #tpu.pipeline_mode<synchronous>, transform_indices = @transform_4, window_bounds = array<i64: 1, 128>}, {transform_indices = @transform_5, window_bounds = array<i64: 32, 256>}, {transform_indices = @transform_6, window_bounds = array<i64: 32, 128>}]} {
    %c0 = arith.constant 0 : index
    %c0_0 = arith.constant 0 : index
    %0 = vector.load %arg2[%c0, %c0_0] : memref<32x128xf32, #tpu.memory_space<vmem>>, vector<32x128xf32>
    %c0_1 = arith.constant 0 : index
    %c0_2 = arith.constant 0 : index
    %1 = vector.load %arg3[%c0_1, %c0_2] : memref<256x128xf32, #tpu.memory_space<vmem>>, vector<256x128xf32>
    %c0_3 = arith.constant 0 : index
    %c0_4 = arith.constant 0 : index
    %2 = vector.load %arg5[%c0_3, %c0_4] : memref<128x256xf32, #tpu.memory_space<vmem>>, vector<128x256xf32>
    %cst = arith.constant dense<0.000000e+00> : vector<32x256xf32>
    %3 = tpu.matmul %0, %1, %cst {dimension_numbers = #tpu.dot_dimension_numbers<[1], [1], [0], [0], [0, 0, 1, 0], [], []>} : vector<32x128xf32>, vector<256x128xf32>, vector<32x256xf32> -> vector<32x256xf32>
    %c0_5 = arith.constant 0 : index
    %c0_6 = arith.constant 0 : index
    %4 = vector.load %arg4[%c0_5, %c0_6] : memref<1x256xf32, #tpu.memory_space<vmem>>, vector<1x256xf32>
    %5 = vector.broadcast %4 : vector<1x256xf32> to vector<32x256xf32>
    %6 = arith.addf %3, %5 : vector<32x256xf32>
    %7 = arith.negf %6 : vector<32x256xf32>
    %8 = math.exp %7 : vector<32x256xf32>
    %cst_7 = arith.constant 1.000000e+00 : f32
    %9 = vector.broadcast %cst_7 : f32 to vector<32x256xf32>
    %10 = arith.addf %9, %8 : vector<32x256xf32>
    %11 = arith.divf %9, %10 : vector<32x256xf32>
    %c0_8 = arith.constant 0 : index
    %c0_9 = arith.constant 0 : index
    %12 = vector.load %arg7[%c0_8, %c0_9] : memref<32x256xf32, #tpu.memory_space<vmem>>, vector<32x256xf32>
    tpu.vector_store %arg7[%c0_8, %c0_9], %11 {strides = array<i32>} : memref<32x256xf32, #tpu.memory_space<vmem>>, vector<32x256xf32>,
    %cst_10 = arith.constant dense<0.000000e+00> : vector<32x128xf32>
    %13 = tpu.matmul %11, %2, %cst_10 {dimension_numbers = #tpu.dot_dimension_numbers<[1], [1], [0], [0], [0, 0, 1, 0], [], []>} : vector<32x256xf32>, vector<128x256xf32>, vector<32x128xf32> -> vector<32x128xf32>
    %c0_i32 = arith.constant 0 : i32
    %14 = arith.cmpi eq, %arg1, %c0_i32 : i32
    %15 = arith.extui %14 : i1 to i32
    %c0_i32_11 = arith.constant 0 : i32
    %16 = arith.cmpi ne, %15, %c0_i32_11 : i32
    scf.if %16 {
      %c0_16 = arith.constant 0 : index
      %c0_17 = arith.constant 0 : index
      %23 = vector.load %arg8[%c0_16, %c0_17] : memref<32x128xf32, #tpu.memory_space<vmem>>, vector<32x128xf32>
      tpu.vector_store %arg8[%c0_16, %c0_17], %13 {strides = array<i32>} : memref<32x128xf32, #tpu.memory_space<vmem>>, vector<32x128xf32>,
    } else {
    }
    %c0_i32_12 = arith.constant 0 : i32
    %17 = arith.cmpi sgt, %arg1, %c0_i32_12 : i32
    %18 = arith.extui %17 : i1 to i32
    %c0_i32_13 = arith.constant 0 : i32
    %19 = arith.cmpi ne, %18, %c0_i32_13 : i32
    scf.if %19 {
      %c0_16 = arith.constant 0 : index
      %c0_17 = arith.constant 0 : index
      %23 = vector.load %arg8[%c0_16, %c0_17] : memref<32x128xf32, #tpu.memory_space<vmem>>, vector<32x128xf32>
      %24 = arith.addf %23, %13 : vector<32x128xf32>
      %c0_18 = arith.constant 0 : index
      %c0_19 = arith.constant 0 : index
      %25 = vector.load %arg8[%c0_18, %c0_19] : memref<32x128xf32, #tpu.memory_space<vmem>>, vector<32x128xf32>
      tpu.vector_store %arg8[%c0_18, %c0_19], %24 {strides = array<i32>} : memref<32x128xf32, #tpu.memory_space<vmem>>, vector<32x128xf32>,
    } else {
    }
    %c0_i32_14 = arith.constant 0 : i32
    %20 = arith.cmpi eq, %arg1, %c0_i32_14 : i32
    %21 = arith.extui %20 : i1 to i32
    %c0_i32_15 = arith.constant 0 : i32
    %22 = arith.cmpi ne, %21, %c0_i32_15 : i32
    scf.if %22 {
      %c0_16 = arith.constant 0 : index
      %c0_17 = arith.constant 0 : index
      %23 = vector.load %arg8[%c0_16, %c0_17] : memref<32x128xf32, #tpu.memory_space<vmem>>, vector<32x128xf32>
      %c0_18 = arith.constant 0 : index
      %c0_19 = arith.constant 0 : index
      %24 = vector.load %arg6[%c0_18, %c0_19] : memref<1x128xf32, #tpu.memory_space<vmem>>, vector<1x128xf32>
      %25 = vector.broadcast %24 : vector<1x128xf32> to vector<32x128xf32>
      %26 = arith.addf %23, %25 : vector<32x128xf32>
      %27 = math.tanh %26 : vector<32x128xf32>
      %c0_20 = arith.constant 0 : index
      %c0_21 = arith.constant 0 : index
      %28 = vector.load %arg8[%c0_20, %c0_21] : memref<32x128xf32, #tpu.memory_space<vmem>>, vector<32x128xf32>
      tpu.vector_store %arg8[%c0_20, %c0_21], %27 {strides = array<i32>} : memref<32x128xf32, #tpu.memory_space<vmem>>, vector<32x128xf32>,
    } else {
    }
    return
  }
  func.func @transform_0(%arg0: i32, %arg1: i32) -> (i32, i32) {
    %c0_i32 = arith.constant 0 : i32
    %c0_i32_0 = arith.constant 0 : i32
    return %arg0, %c0_i32 : i32, i32
  }
  func.func @transform_1(%arg0: i32, %arg1: i32) -> (i32, i32) {
    %c0_i32 = arith.constant 0 : i32
    %c0_i32_0 = arith.constant 0 : i32
    return %arg1, %c0_i32 : i32, i32
  }
  func.func @transform_2(%arg0: i32, %arg1: i32) -> (i32, i32) {
    %c0_i32 = arith.constant 0 : i32
    %c0_i32_0 = arith.constant 0 : i32
    return %c0_i32, %arg1 : i32, i32
  }
  func.func @transform_3(%arg0: i32, %arg1: i32) -> (i32, i32) {
    %c0_i32 = arith.constant 0 : i32
    %c0_i32_0 = arith.constant 0 : i32
    return %c0_i32, %arg1 : i32, i32
  }
  func.func @transform_4(%arg0: i32, %arg1: i32) -> (i32, i32) {
    %c0_i32 = arith.constant 0 : i32
    %c0_i32_0 = arith.constant 0 : i32
    %c0_i32_1 = arith.constant 0 : i32
    return %c0_i32, %c0_i32_0 : i32, i32
  }
  func.func @transform_5(%arg0: i32, %arg1: i32) -> (i32, i32) {
    %c0_i32 = arith.constant 0 : i32
    return %arg0, %arg1 : i32, i32
  }
  func.func @transform_6(%arg0: i32, %arg1: i32) -> (i32, i32) {
    %c0_i32 = arith.constant 0 : i32
    %c0_i32_0 = arith.constant 0 : i32
    return %arg0, %c0_i32 : i32, i32
  }
}

</mosaic_0001>

<bundles_post_ra>
// kernel: tpu_custom_call.1
= control target key start
LH: loop header
LB: loop body
LE: loop exit
PB: predicated region body
PF: predicated region fallthrough
CT: control target
= control target key end

     0   :  { %12 = vsyncpa [#allocation3], 0  ;;  %s1771_s0 = inlined_call_operand.hbm [shape: f32[64,128], index: 0, kind: input, shape index: {}]   ;;  %s1772_s1 = inlined_call_operand.hbm [shape: f32[256,128], index: 1, kind: input, shape index: {}]   ;;  %s1773_s2 = inlined_call_operand.vmem [shape: f32[1,256], index: 2, kind: input, shape index: {}]   ;;  %s1774_s3 = inlined_call_operand.hbm [shape: f32[128,256], index: 3, kind: input, shape index: {}]   ;;  %s1775_s4 = inlined_call_operand.vmem [shape: f32[1,128], index: 4, kind: input, shape index: {}]   ;;  %s1776_s5 = inlined_call_operand.hbm [shape: f32[64,256], index: 5, kind: output, shape index: {0}]   ;;  %s1777_s6 = inlined_call_operand.hbm [shape: f32[64,128], index: 6, kind: output, shape index: {1}]  }
   0x1   :  { %14 = vsyncpa [#allocation3 + $0x1], 0 }
   0x2   :  { %15 = vsyncpa [#allocation6], 0 }
   0x3   :  { %16 = vsyncpa [#allocation4], 0 }
   0x4   :  { %18 = vsyncpa [#allocation4 + $0x1], 0 }
   0x5   :  { %19 = vsyncpa [#allocation10], 0 }
   0x6   :  { %21 = vsyncpa [#allocation10 + $0x1], 0  ;;  %s1446_s21 = smov 0   ;;  %s1448_s22 = smov 0  }
   0x7   :  { %s1450_s23 = smov 0   ;;  %s1452_s24 = smov 0  }
   0x8   :  { %s1454_s25 = smov 0   ;;  %s1456_s26 = smov 0  }
   0x9 LB: > { %s914_s27 = sadd.s32 4294967295, %s1396_s26   ;;  %s915_s28 = sadd.s32 4294967294, %s1396_s26   ;;  %s1396_s26 = sphi %s1456_s26, %s27_s26   ;;  %s1392_s25 = sphi %s1454_s25, %s1804_s25   ;;  %s1388_s24 = sphi %s1452_s24, %s1803_s24   ;;  %s1384_s23 = sphi %s1450_s23, %s1802_s23   ;;  %s1380_s22 = sphi %s1448_s22, %s1801_s22   ;;  %s1376_s21 = sphi %s1446_s21, %s1800_s21  }
   0xa   : > { %p59_p0 = scmp.ne.s32.totalorder %s1380_s22, %s1376_s21  ;;  %p1480_p1 = scmp.eq.s32.totalorder %s914_s27, 0 }
   0xb   : > { %p1484_p2 = scmp.eq.s32.totalorder %s914_s27, 1  ;;  %p190_p3 = scmp.eq.s32.totalorder %s915_s28, 1 }
   0xc   : > { %s1784_s29 = scalar_select %p1480_p1, 1, 0 }
   0xd   : > { %p1490_p4 = por %p1480_p1, %p59_p0  ;;  %p916_p5 = scmp.ge.s32.totalorder %s1396_s26, 1 }
   0xe   : > { %p1495_p6 = por %p190_p3, %p59_p0  ;;  %p223_p7 = scmp.lt.s32.totalorder %s1396_s26, 3 }
   0xf   : > { %s1786_s7 = scalar_select %p1490_p4, 1, 0 }
  0x10   : > { %s1787_s8 = scalar_select %p1495_p6, 1, 0 }
  0x11   : > { %p1500_p8 = pnand %p916_p5, %p223_p7  ;;  %s1398_s10 = smov [#allocation5]  }
  0x12   : > { %1788 = sst [smem:[#allocation15_spill]] %s1787_s8  ;;  %s238_s11 = sshll.u32 %s1398_s10, 4  ;;  %s1504_s11 = int_to_ptr.vmem [resolvable:$true] %s238_s11 }
  0x13   : > { %p1070_p9 = pneg %p1500_p8  ;;  %s1399_s13 = smov [#allocation7]  }
  0x14   : > { %s262_s14 = sshll.u32 %s1399_s13, 4  ;;  %s1192_s17 = scalar_lea.hbm %s1772_s1, 4096  ;;  %s1515_s14 = int_to_ptr.vmem [resolvable:$true] %s262_s14 }
  0x15   : > { %p1511_p11 = pnand %p1070_p9, %p1480_p1  ;;  %p1193_p12 = scmp.ne.s32.totalorder %s1772_s1, %s1192_s17 }
  0x16   : > { %p1199_p5 = scmp.lt.u32.totalorder %s1192_s17, %s1772_s1 }
  0x17   : > { %p1194_p13 = pneg %p1511_p11 }
  0x19   : > { %p1195_p0 = pnand %p1194_p13, %p1193_p12 }
  0x1b   : > { %p1196_p3 = pneg %p1195_p0 }
  0x1d   : > { %p1201_p7 = pnand %p1199_p5, %p1196_p3 }
  0x1f   : > { %1204 = shalt.err (!%p1201_p7)
}
  0x20   : > { %s1205_s28 = scalar_lea.vmem %s1504_s11, 4096  ;;  %p1213_p1 = scmp.lt.s32.totalorder %s1504_s11, %s1504_s11 }
  0x21   : > { %p1206_p9 = scmp.ne.s32.totalorder %s1504_s11, %s1205_s28  ;;  %p1214_p12 = scmp.lt.s32.totalorder %s1205_s28, %s1205_s28 }
  0x23   : > { %p1208_p10 = pnand %p1206_p9, %p1194_p13  ;;  %p1215_p0 = por %p1214_p12, %p1213_p1 }
  0x25   : > { %p1209_p6 = pneg %p1208_p10 }
  0x27   : > { %p1216_p4 = pnand %p1215_p0, %p1209_p6 }
  0x29   : > { %1219 = shalt.err (!%p1216_p4)
}
  0x2a   : > { %s1782_s10 = smov 128   ;;  %s1401_s13 = smov 8  }
  0x2b   : > { %1073 = dma.hbm_to_vmem [thread:$0]  (!%p1511_p11), %s1772_s1, 4096, %s1504_s11, [#allocation6], %s1782_s10, %s1782_s10, %s1401_s13  }
  0x2c   : > { %s1220_s19 = scalar_lea.hbm %s1774_s3, 4096 }
  0x2d   : > { %p1221_p1 = scmp.ne.s32.totalorder %s1774_s3, %s1220_s19  ;;  %p1227_p10 = scmp.lt.u32.totalorder %s1220_s19, %s1774_s3 }
  0x2f   : > { %p1223_p4 = pnand %p1221_p1, %p1194_p13 }
  0x31   : > { %p1224_p6 = pneg %p1223_p4 }
  0x33   : > { %p1229_p3 = pnand %p1227_p10, %p1224_p6 }
  0x35   : > { %1232 = shalt.err (!%p1229_p3)
}
  0x36   : > { %s1233_s11 = scalar_lea.vmem %s1515_s14, 4096  ;;  %p1241_p12 = scmp.lt.s32.totalorder %s1515_s14, %s1515_s14 }
  0x37   : > { %p1234_p5 = scmp.ne.s32.totalorder %s1515_s14, %s1233_s11  ;;  %p1242_p0 = scmp.lt.s32.totalorder %s1233_s11, %s1233_s11 }
  0x39   : > { %p1236_p7 = pnand %p1234_p5, %p1194_p13  ;;  %p1243_p1 = por %p1242_p0, %p1241_p12 }
  0x3b   : > { %p1237_p9 = pneg %p1236_p7 }
  0x3d   : > { %p1244_p4 = pnand %p1243_p1, %p1237_p9 }
  0x3f   : > { %1247 = shalt.err (!%p1244_p4)
}
  0x40   : > { %s1402_s8 = smov 256   ;;  %s1403_s15 = smov 16  }
  0x41   : > { %1076 = dma.hbm_to_vmem [thread:$0]  (!%p1511_p11), %s1774_s3, 4096, %s1515_s14, [#allocation6], %s1402_s8, %s1402_s8, %s1403_s15  }
  0x42   : > { %s39_s18 = sadd.s32 1, %s1392_s25  ;;  %s46_s19 = sadd.s32 1, %s1384_s23 }
  0x43   : > { %p41_p13 = scmp.ge.s32.totalorder %s39_s18, 2  ;;  %p53_p6 = scmp.ne.s32.totalorder %s1384_s23, %s1380_s22 }
  0x44   : > { %p54_p10 = scmp.eq.s32.totalorder %s1396_s26, 0  ;;  %p1090_p3 = scmp.lt.s32.totalorder %s1396_s26, 2 }
  0x45   : > { %s1806_s18 = smov (%p41_p13, %s39_s18), 0  ;;  %p1582_p7 = por %p1484_p2, %p53_p6 }
  0x46   : > { %p55_p5 = por %p54_p10, %p53_p6  ;;  %s43_s12 = ssub.s32 %s1392_s25, %s1806_s18 }
  0x47   : > { %s1791_s20 = scalar_select %p1582_p7, 1, 0 }
  0x48   : > { %s279_s27 = sand.u32 1, %s1384_s23   ;;  %p44_p9 = scmp.eq.s32.totalorder %s43_s12, 0 }
  0x49   : > { %s921_s14 = sshll.u32 %s279_s27, 5  ;;  %s948_s28 = sshll.u32 %s1392_s25, 9 }
  0x4a   : > { %s1591_s11 = scalar_select %p44_p9, %s1384_s23, %s46_s19  }
  0x4b   : > { %s1596_s16 = scalar_lea.hbm %s1771_s0, %s948_s28  ;;  %s283_s30 = scalar_lea.vmem [#allocation2], %s921_s14 }
  0x4c   : > { %s290_s17 = sshll.u32 %s283_s30, 4  ;;  %p1600_p2 = pnand %p1090_p3, %p55_p5  ;;  %s1604_s17 = int_to_ptr.vmem [resolvable:$true] %s290_s17 }
  0x4d   : > { %s1606_s19 = scalar_lea.sflag [#allocation3], %s279_s27  ;;  %s1248_s12 = scalar_lea.hbm %s1596_s16, 512 }
  0x4e   : > { %p1249_p11 = scmp.ne.s32.totalorder %s1596_s16, %s1248_s12  ;;  %p1250_p12 = pneg %p1600_p2 }
  0x4f   : > { %s1253_s8 = scalar_lea.hbm %s1771_s0, 1024  ;;  %p1254_p4 = scmp.lt.u32.totalorder %s1596_s16, %s1771_s0 }
  0x50   : > { %p1251_p0 = pnand %p1250_p12, %p1249_p11  ;;  %p1255_p13 = scmp.lt.u32.totalorder %s1253_s8, %s1248_s12 }
  0x51   : > { %p1257_p10 = scmp.lt.u32.totalorder %s1248_s12, %s1596_s16 }
  0x52   : > { %p1252_p1 = pneg %p1251_p0  ;;  %p1256_p6 = por %p1255_p13, %p1254_p4 }
  0x54   : > { %p1258_p3 = por %p1257_p10, %p1256_p6 }
  0x56   : > { %p1259_p5 = pnand %p1258_p3, %p1252_p1 }
  0x58   : > { %1262 = shalt.err (!%p1259_p5)
}
  0x59   : > { %s1263_s27 = scalar_lea.vmem %s1604_s17, 512  ;;  %s1404_s14 = smov [#allocation2]  }
  0x5a   : > { %p1264_p9 = scmp.ne.s32.totalorder %s1604_s17, %s1263_s27  ;;  %s1268_s28 = sshll.u32 %s1404_s14, 4  ;;  %s1269_s28 = int_to_ptr.vmem [resolvable:$false] %s1268_s28 }
  0x5b   : > { %s1270_s15 = scalar_lea.vmem %s1269_s28, 1024  ;;  %p1271_p7 = scmp.lt.s32.totalorder %s1604_s17, %s1269_s28 }
  0x5c   : > { %p1266_p11 = pnand %p1264_p9, %p1250_p12  ;;  %p1272_p4 = scmp.lt.s32.totalorder %s1270_s15, %s1263_s27 }
  0x5e   : > { %p1267_p0 = pneg %p1266_p11  ;;  %p1273_p13 = por %p1272_p4, %p1271_p7 }
  0x60   : > { %p1274_p6 = pnand %p1273_p13, %p1267_p0 }
  0x62   : > { %1277 = shalt.err (!%p1274_p6)
}
  0x63   : > { %s1793_s12 = smov 128   ;;  %302 = sbr.rel (%p1500_p8) target bundleno = 673 (0x2a1), region = 40 }
  0x64   : > { %1080 = dma.hbm_to_vmem [thread:$0]  (!%p1600_p2), %s1596_s16, 512, %s1604_s17, %s1606_s19, %s1793_s12, %s1793_s12, %s1401_s13  }
  0x65   : > { %s1640_s8 = sand.u32 (!%p1500_p8), 1, %s1380_s22   ;;  %p1794_p7 = scmp.ne.s32.totalorder (!%p1500_p8), %s1786_s7, 0 }
  0x66   : > { %s925_s30 = sshll.u32 (!%p1500_p8), %s1640_s8, 5  ;;  %s305_s27 = scalar_lea.sflag (!%p1500_p8), [#allocation3], %s1640_s8 }
  0x67   : > { %s1646_s10 = scalar_lea.vmem (!%p1500_p8), [#allocation2], %s925_s30 }
  0x6a   : > { %1359 = dma.done.wait (%p1794_p7), %s305_s27, 512  }
  0x6b   : > { %1361 = vsyncadd (%p1794_p7), %s305_s27, 4294966784  ;;  %p1795_p2 = scmp.ne.s32.totalorder %s1784_s29, 0 }
  0x6d   : > { %1363 = dma.done.wait (%p1795_p2), [#allocation6], 8192  }
  0x6e   : > { %1365 = vsyncadd (%p1795_p2), [#allocation6], 4294959104  ;;  %v385_v0 = vld [vmem:[#allocation5 + $0x80] sm:$0xff]  ;;  %v386_v1 = vld [vmem:[#allocation5 + $0x88] sm:$0xff]  ;;  %s928_s9 = sshll.u32 %s1640_s8, 6  ;;  %s950_s16 = sshll.u32 %s1388_s24, 10 }
  0x6f   : > { %v369_v2 = vld [vmem:[#allocation5] sm:$0xff]  ;;  %v992_v3 = vpack.c.bf16 %v386_v1, %v385_v0  ;;  %v370_v4 = vld [vmem:[#allocation5 + $0x8] sm:$0xff]  ;;  %v387_v5 = vld [vmem:[#allocation5 + $0x90] sm:$0xff]  ;;  %s1668_s13 = scalar_lea.vmem [#allocation8], %s928_s9  ;;  %s1683_s28 = scalar_lea.hbm %s1776_s5, %s950_s16 }
  0x70   : > { %v388_v6 = vld [vmem:[#allocation5 + $0x98] sm:$0xff]  ;;  %v994_v7 = vpack.c.bf16 %v370_v4, %v369_v2  ;;  %v371_v9 = vld [vmem:[#allocation5 + $0x10] sm:$0xff]  ;;  %v389_v11 = vld [vmem:[#allocation5 + $0xa0] sm:$0xff]  ;;  %s747_s17 = sshll.u32 %s1668_s13, 4  ;;  %s726_s15 = scalar_lea.sflag [#allocation4], %s1640_s8  ;;  %s1685_s17 = int_to_ptr.vmem [resolvable:$true] %s747_s17 }
  0x71   : > { %v996_v8 = vpack.c.bf16 %v388_v6, %v387_v5  ;;  %993 = vmatprep.subr.bf16.mxu0 %v992_v3  ;;  %v372_v10 = vld [vmem:[#allocation5 + $0x18] sm:$0xff]  ;;  %v390_v12 = vld [vmem:[#allocation5 + $0xa8] sm:$0xff]  ;;  %v1657_v15 = vld [vmem:[%s1646_s10] sm:$0xff]  ;;  %s1278_s12 = scalar_lea.vmem %s1685_s17, 1024  ;;  %p1796_p12 = scmp.ne.s32.totalorder %s1791_s20, 0 }
  0x72   : > { %995 = vmatpush3.bf16.xpose.msra.mxu0 %v994_v7  ;;  %v998_v13 = vpack.c.bf16 %v372_v10, %v371_v9  ;;  %v1000_v14 = vpack.c.bf16 %v390_v12, %v389_v11  ;;  %v373_v16 = vld [vmem:[#allocation5 + $0x20] sm:$0xff]  ;;  %v374_v17 = vld [vmem:[#allocation5 + $0x28] sm:$0xff]  ;;  %984 = vmatprep.mubr.f32.mxu0 %v1657_v15  ;;  %v404_v19 = vld [vmem:[#allocation7 + $0x18] sm:$0xff]  ;;  %p1279_p8 = scmp.ne.s32.totalorder %s1685_s17, %s1278_s12  ;;  %s1405_s27 = smov [#allocation8]  }
  0x73   : > { %997 = vmatprep.subr.bf16.mxu0 %v996_v8  ;;  %v402_v18 = vld [vmem:[#allocation7 + $0x8] sm:$0xff]  ;;  %v401_v20 = vld [vmem:[#allocation7] sm:$0xff]  ;;  %v403_v22 = vld [vmem:[#allocation7 + $0x10] sm:$0xff]  ;;  %v1002_v29 = vpack.c.bf16 %v374_v17, %v373_v16 }
  0x74   : > { %v1024_v21 = vpack.c.bf16 %v404_v19, %v402_v18  ;;  %v406_v23 = vld [vmem:[#allocation7 + $0x28] sm:$0xff]  ;;  %v408_v24 = vld [vmem:[#allocation7 + $0x38] sm:$0xff]  ;;  %v391_v25 = vld [vmem:[#allocation5 + $0xb0] sm:$0xff]  ;;  %v1026_v27 = vpack.c.bf16 %v403_v22, %v401_v20  ;;  %p1280_p1 = pnand %p1279_p8, %p1796_p12 }
  0x75   : > { %v392_v26 = vld [vmem:[#allocation5 + $0xb8] sm:$0xff]  ;;  %v1028_v28 = vpack.c.bf16 %v408_v24, %v406_v23  ;;  %v405_v31 = vld [vmem:[#allocation7 + $0x20] sm:$0xff]  ;;  %v407_v32 = vld [vmem:[#allocation7 + $0x30] sm:$0xff] }
  0x76   : > { %1025 = vmatprep.subr.bf16.mxu1 %v1024_v21  ;;  %v1004_v30 = vpack.c.bf16 %v392_v26, %v391_v25  ;;  %v410_v33 = vld [vmem:[#allocation7 + $0x48] sm:$0xff]  ;;  %v412_v34 = vld [vmem:[#allocation7 + $0x58] sm:$0xff]  ;;  %v1030_v35 = vpack.c.bf16 %v407_v32, %v405_v31  ;;  %v375_v36 = vld [vmem:[#allocation5 + $0x30] sm:$0xff]  ;;  %p1281_p10 = pneg %p1280_p1 }
  0x77   : > { %1027 = vmatpush1.bf16.xpose.msra.mxu1 %v1026_v27  ;;  %v376_v37 = vld [vmem:[#allocation5 + $0x38] sm:$0xff]  ;;  %v1032_v38 = vpack.c.bf16 %v412_v34, %v410_v33  ;;  %v393_v39 = vld [vmem:[#allocation5 + $0xc0] sm:$0xff]  ;;  %v394_v40 = vld [vmem:[#allocation5 + $0xc8] sm:$0xff] }
  0x78   : > { %1029 = vmatprep.subr.bf16.mxu1 %v1028_v28  ;;  %v1006_v41 = vpack.c.bf16 %v376_v37, %v375_v36  ;;  %v1008_v42 = vpack.c.bf16 %v394_v40, %v393_v39  ;;  %v409_v43 = vld [vmem:[#allocation7 + $0x40] sm:$0xff]  ;;  %v411_v44 = vld [vmem:[#allocation7 + $0x50] sm:$0xff]  ;;  %v414_v45 = vld [vmem:[#allocation7 + $0x68] sm:$0xff]  ;;  %v435_v36 = vlaneseq }
  0x79   : > { %v416_v46 = vld [vmem:[#allocation7 + $0x78] sm:$0xff]  ;;  %v1034_v47 = vpack.c.bf16 %v411_v44, %v409_v43  ;;  %v377_v48 = vld [vmem:[#allocation5 + $0x40] sm:$0xff]  ;;  %v378_v49 = vld [vmem:[#allocation5 + $0x48] sm:$0xff] }
  0x7a   : > { %999 = vmatpush3.bf16.xpose.msra.mxu0 %v998_v13  ;;  %v1036_v50 = vpack.c.bf16 %v416_v46, %v414_v45  ;;  %v395_v51 = vld [vmem:[#allocation5 + $0xd0] sm:$0xff]  ;;  %v396_v52 = vld [vmem:[#allocation5 + $0xd8] sm:$0xff]  ;;  %v1010_v53 = vpack.c.bf16 %v378_v49, %v377_v48  ;;  %v413_v55 = vld [vmem:[#allocation7 + $0x60] sm:$0xff]  ;;  %v436_v37 = vshrl.u32 %v435_v36, 7 }
  0x7b   : > { %1001 = vmatprep.subr.bf16.mxu0 %v1000_v14  ;;  %v1012_v54 = vpack.c.bf16 %v396_v52, %v395_v51  ;;  %v415_v56 = vld [vmem:[#allocation7 + $0x70] sm:$0xff]  ;;  %v418_v57 = vld [vmem:[#allocation7 + $0x88] sm:$0xff]  ;;  %v420_v58 = vld [vmem:[#allocation7 + $0x98] sm:$0xff] }
  0x7c   : > { %v1038_v59 = vpack.c.bf16 %v415_v56, %v413_v55  ;;  %v379_v60 = vld [vmem:[#allocation5 + $0x50] sm:$0xff]  ;;  %v380_v61 = vld [vmem:[#allocation5 + $0x58] sm:$0xff]  ;;  %v1040_v62 = vpack.c.bf16 %v420_v58, %v418_v57  ;;  %v397_v63 = vld [vmem:[#allocation5 + $0xe0] sm:$0xff]  ;;  %v441_v40 = vsub.s32 1, %v436_v37 }
  0x7d   : > { %v398_v0 = vld [vmem:[#allocation5 + $0xe8] sm:$0xff]  ;;  %v1014_v1 = vpack.c.bf16 %v380_v61, %v379_v60  ;;  %v381_v3 = vld [vmem:[#allocation5 + $0x60] sm:$0xff]  ;;  %v399_v5 = vld [vmem:[#allocation5 + $0xf0] sm:$0xff] }
  0x7e   : > { %v1016_v2 = vpack.c.bf16 %v398_v0, %v397_v63  ;;  %v382_v4 = vld [vmem:[#allocation5 + $0x68] sm:$0xff]  ;;  %v400_v6 = vld [vmem:[#allocation5 + $0xf8] sm:$0xff]  ;;  %v383_v9 = vld [vmem:[#allocation5 + $0x70] sm:$0xff] }
  0x7f   : > { %1031 = vmatpush1.bf16.xpose.msra.mxu1 %v1030_v35  ;;  %v1018_v7 = vpack.c.bf16 %v382_v4, %v381_v3  ;;  %v1020_v8 = vpack.c.bf16 %v400_v6, %v399_v5  ;;  %v384_v10 = vld [vmem:[#allocation5 + $0x78] sm:$0xff]  ;;  %v366_v12 = vld [vmem:[%s1646_s10 + $0x8] sm:$0xff]  ;;  %v367_v13 = vld [vmem:[%s1646_s10 + $0x10] sm:$0xff] }
  0x80   : > { %1033 = vmatprep.subr.bf16.mxu1 %v1032_v38  ;;  %v1022_v11 = vpack.c.bf16 %v384_v10, %v383_v9  ;;  %v368_v14 = vld [vmem:[%s1646_s10 + $0x18] sm:$0xff]  ;;  %v417_v16 = vld [vmem:[#allocation7 + $0x80] sm:$0xff]  ;;  %v419_v17 = vld [vmem:[#allocation7 + $0x90] sm:$0xff]  ;;  %v437_v38 = vsub.s32 0, %v436_v37  ;;  %s1282_s10 = sshll.u32 %s1405_s27, 4  ;;  %s1283_s10 = int_to_ptr.vmem [resolvable:$false] %s1282_s10 }
  0x81   : > { %v1042_v18 = vpack.c.bf16 %v419_v17, %v417_v16  ;;  %v422_v19 = vld [vmem:[#allocation7 + $0xa8] sm:$0xff]  ;;  %v424_v20 = vld [vmem:[#allocation7 + $0xb8] sm:$0xff]  ;;  %v421_v22 = vld [vmem:[#allocation7 + $0xa0] sm:$0xff]  ;;  %s1284_s29 = scalar_lea.vmem %s1283_s10, 2048  ;;  %p1285_p3 = scmp.lt.s32.totalorder %s1685_s17, %s1283_s10 }
  0x82   : > { %1003 = vmatpush3.bf16.xpose.msra.mxu0 %v1002_v29  ;;  %v1044_v21 = vpack.c.bf16 %v424_v20, %v422_v19  ;;  %v423_v23 = vld [vmem:[#allocation7 + $0xb0] sm:$0xff]  ;;  %v428_v25 = vld [vmem:[#allocation7 + $0xd8] sm:$0xff]  ;;  %v425_v27 = vld [vmem:[#allocation7 + $0xc0] sm:$0xff]  ;;  %p1286_p5 = scmp.lt.s32.totalorder %s1284_s29, %s1278_s12 }
  0x83   : > { %1005 = vmatprep.subr.bf16.mxu0 %v1004_v30  ;;  %v1046_v24 = vpack.c.bf16 %v423_v23, %v421_v22  ;;  %v427_v28 = vld [vmem:[#allocation7 + $0xd0] sm:$0xff]  ;;  %v430_v30 = vld [vmem:[#allocation7 + $0xe8] sm:$0xff]  ;;  %v432_v31 = vld [vmem:[#allocation7 + $0xf8] sm:$0xff] }
  0x84   : > { %v1050_v29 = vpack.c.bf16 %v427_v28, %v425_v27  ;;  %v1052_v32 = vpack.c.bf16 %v432_v31, %v430_v30  ;;  %v429_v33 = vld [vmem:[#allocation7 + $0xe0] sm:$0xff]  ;;  %v431_v34 = vld [vmem:[#allocation7 + $0xf0] sm:$0xff]  ;;  %p1287_p9 = por %p1286_p5, %p1285_p3 }
  0x85   : > { %v1054_v35 = vpack.c.bf16 %v431_v34, %v429_v33  ;;  %v433_v39 = vld [vmem:[%s1773_s2] sm:$0x3] }
  0x86   : > { %p1288_p11 = pnand %p1287_p9, %p1281_p10 }
  0x87   : > { %1035 = vmatpush1.bf16.xpose.msra.mxu1 %v1034_v47 }
  0x88   : > { %1037 = vmatprep.subr.bf16.mxu1 %v1036_v50 }
  0x8a   : > { %1007 = vmatpush3.bf16.xpose.msra.mxu0 %v1006_v41  ;;  %v438_v41 = vrot.slane %v433_v39, %v437_v38 }
  0x8b   : > { %1009 = vmatprep.subr.bf16.mxu0 %v1008_v42  ;;  %v442_v42 = vrot.slane %v433_v39, %v441_v40 }
  0x8f   : > { %1039 = vmatpush1.bf16.xpose.msra.mxu1 %v1038_v59 }
  0x90   : > { %1041 = vmatprep.subr.bf16.mxu1 %v1040_v62 }
  0x92   : > { %1011 = vmatpush3.bf16.xpose.msra.mxu0 %v1010_v53 }
  0x93   : > { %1013 = vmatprep.subr.bf16.mxu0 %v1012_v54 }
  0x97   : > { %1043 = vmatpush1.bf16.xpose.msra.mxu1 %v1042_v18 }
  0x98   : > { %1045 = vmatprep.subr.bf16.mxu1 %v1044_v21 }
  0x9a   : > { %1015 = vmatpush3.bf16.xpose.msra.mxu0 %v1014_v1 }
  0x9b   : > { %1017 = vmatprep.subr.bf16.mxu0 %v1016_v2 }
  0x9f   : > { %1047 = vmatpush1.bf16.xpose.msra.mxu1 %v1046_v24 }
  0xa2   : > { %1019 = vmatpush3.bf16.xpose.msra.mxu0 %v1018_v7 }
  0xa3   : > { %1021 = vmatprep.subr.bf16.mxu0 %v1020_v8 }
  0xaa   : > { %1023 = vmatpush3.bf16.xpose.msra.mxu0 %v1022_v11 }
  0xb1   : > { %985 = vmatmul.mubr.f32.vlgmr.msra.gmra.mrb[0].mxu0 %v1657_v15  ;;  %v426_v15 = vld [vmem:[#allocation7 + $0xc8] sm:$0xff] }
  0xb2   : > { %986 = vmatprep.mubr.f32.mxu0 %v366_v12  ;;  %v1048_v26 = vpack.c.bf16 %v428_v25, %v426_v15 }
  0xb4   : > { %1049 = vmatprep.subr.bf16.mxu1 %v1048_v26 }
  0xb5   : > { %987 = vmatmul.mubr.f32.gmra.mrb[2].mxu0 %v366_v12  ;;  %1051 = vmatpush1.bf16.xpose.msra.mxu1 %v1050_v29 }
  0xb6   : > { %988 = vmatprep.mubr.f32.mxu0 %v367_v13  ;;  %1053 = vmatprep.subr.bf16.mxu1 %v1052_v32 }
  0xb9   : > { %989 = vmatmul.mubr.f32.gmra.mrb[4].mxu0 %v367_v13 }
  0xba   : > { %990 = vmatprep.mubr.f32.mxu0 %v368_v14 }
  0xbd   : > { %991 = vmatmul.mubr.f32.gmra.mrb[6].mxu0 %v368_v14  ;;  %1055 = vmatpush1.bf16.xpose.msra.mxu1 %v1054_v35 }
 0x184   : > { %v511_v43 = vpop.f32.mrb[0].mxu0 }
 0x185   : > { %v512_v44 = vadd.f32 %v511_v43, %v438_v41  ;;  %v513_v45 = vpop.f32.mrb[1].mxu0 }
 0x186   : > { %v514_v46 = vadd.f32 %v513_v45, %v442_v42 }
 0x187   : > { %v930_v47 = vmul.f32 -1.442695, %v512_v44 }
 0x188   : > { %v931_v48 = vmul.f32 -1.442695, %v514_v46  ;;  %v517_v49 = vpop.f32.mrb[2].mxu0 }
 0x189   : > { %1152 = vpow2.f32 %v930_v47  ;;  %v518_v50 = vadd.f32 %v517_v49, %v438_v41  ;;  %v519_v51 = vpop.f32.mrb[3].mxu0 }
 0x18a   : > { %1154 = vpow2.f32 %v931_v48  ;;  %v520_v52 = vadd.f32 %v519_v51, %v442_v42 }
 0x18b   : > { %v932_v53 = vmul.f32 -1.442695, %v518_v50 }
 0x18c   : > { %v933_v54 = vmul.f32 -1.442695, %v520_v52  ;;  %v523_v55 = vpop.f32.mrb[4].mxu0 }
 0x18d   : > { %1156 = vpow2.f32 %v932_v53  ;;  %v524_v56 = vadd.f32 %v523_v55, %v438_v41  ;;  %v525_v57 = vpop.f32.mrb[5].mxu0 }
 0x18e   : > { %1158 = vpow2.f32 %v933_v54  ;;  %v526_v58 = vadd.f32 %v525_v57, %v442_v42 }
 0x18f   : > { %v934_v59 = vmul.f32 -1.442695, %v524_v56 }
 0x190   : > { %v935_v60 = vmul.f32 -1.442695, %v526_v58  ;;  %v529_v61 = vpop.f32.mrb[6].mxu0 }
 0x191   : > { %1160 = vpow2.f32 %v934_v59  ;;  %v530_v62 = vadd.f32 %v529_v61, %v438_v41  ;;  %v531_v63 = vpop.f32.mrb[7].mxu0 }
 0x192   : > { %1162 = vpow2.f32 %v935_v60  ;;  %v532_v0 = vadd.f32 %v531_v63, %v442_v42 }
 0x193   : > { %v1153_v1 = vpop.eup %1152  ;;  %v936_v2 = vmul.f32 -1.442695, %v530_v62 }
 0x194   : > { %v1155_v3 = vpop.eup %1154  ;;  %v558_v4 = vadd.f32 1.0, %v1153_v1  ;;  %v937_v5 = vmul.f32 -1.442695, %v532_v0 }
 0x195   : > { %v559_v6 = vadd.f32 1.0, %v1155_v3  ;;  %1164 = vpow2.f32 %v936_v2 }
 0x196   : > { %1166 = vrcp.f32 %v558_v4 }
 0x197   : > { %v1157_v7 = vpop.eup %1156  ;;  %1168 = vrcp.f32 %v559_v6 }
 0x198   : > { %v1159_v8 = vpop.eup %1158  ;;  %v560_v9 = vadd.f32 1.0, %v1157_v7  ;;  %1170 = vpow2.f32 %v937_v5 }
 0x199   : > { %v561_v10 = vadd.f32 1.0, %v1159_v8 }
 0x19a   : > { %1172 = vrcp.f32 %v560_v9 }
 0x19b   : > { %v1161_v11 = vpop.eup %1160  ;;  %1174 = vrcp.f32 %v561_v10 }
 0x19c   : > { %v1163_v12 = vpop.eup %1162  ;;  %v562_v13 = vadd.f32 1.0, %v1161_v11 }
 0x19d   : > { %v563_v14 = vadd.f32 1.0, %v1163_v12 }
 0x19e   : > { %1176 = vrcp.f32 %v562_v13 }
 0x19f   : > { %v1165_v16 = vpop.eup %1164  ;;  %1178 = vrcp.f32 %v563_v14 }
 0x1a0   : > { %v1167_v17 = vpop.eup %1166  ;;  %v564_v18 = vadd.f32 1.0, %v1165_v16 }
 0x1a1   : > { %v1169_v19 = vpop.eup %1168  ;;  %582 = vst [vmem:[%s1668_s13] sm:$0xff] %v1167_v17 }
 0x1a2   : > { %v1171_v20 = vpop.eup %1170  ;;  %583 = vst [vmem:[%s1668_s13 + $0x8] sm:$0xff] %v1169_v19  ;;  %1180 = vrcp.f32 %v564_v18  ;;  %654 = vmatprep.mubr.f32.mxu1 %v1169_v19 }
 0x1a3   : > { %v565_v21 = vadd.f32 1.0, %v1171_v20  ;;  %655 = vmatmul.mubr.f32.vlgmr.msra.gmra.mrb[0].mxu1 %v1167_v17 }
 0x1a4   : > { %v1173_v22 = vpop.eup %1172 }
 0x1a5   : > { %v1175_v23 = vpop.eup %1174  ;;  %584 = vst [vmem:[%s1668_s13 + $0x10] sm:$0xff] %v1173_v22  ;;  %1182 = vrcp.f32 %v565_v21 }
 0x1a6   : > { %585 = vst [vmem:[%s1668_s13 + $0x18] sm:$0xff] %v1175_v23  ;;  %659 = vmatprep.mubr.f32.mxu1 %v1175_v23 }
 0x1a7   : > { %660 = vmatmul.mubr.f32.gmra.mrb[2].mxu1 %v1173_v22 }
 0x1a8   : > { %v1177_v24 = vpop.eup %1176 }
 0x1a9   : > { %v1179_v15 = vpop.eup %1178  ;;  %586 = vst [vmem:[%s1668_s13 + $0x20] sm:$0xff] %v1177_v24 }
 0x1aa   : > { %587 = vst [vmem:[%s1668_s13 + $0x28] sm:$0xff] %v1179_v15  ;;  %664 = vmatprep.mubr.f32.mxu1 %v1179_v15 }
 0x1ab   : > { %665 = vmatmul.mubr.f32.gmra.mrb[4].mxu1 %v1177_v24 }
 0x1ac   : > { %v1181_v25 = vpop.eup %1180 }
 0x1ad   : > { %588 = vst [vmem:[%s1668_s13 + $0x30] sm:$0xff] %v1181_v25 }
 0x1af   : > { %v1183_v26 = vpop.eup %1182 }
 0x1b0   : > { %589 = vst [vmem:[%s1668_s13 + $0x38] sm:$0xff] %v1183_v26  ;;  %669 = vmatprep.mubr.f32.mxu1 %v1183_v26 }
 0x1b1   : > { %670 = vmatmul.mubr.f32.gmra.mrb[6].mxu1 %v1181_v25 }
 0x1b2   : > { %1291 = shalt.err (!%p1288_p11)
}
 0x1b3   : > { %s1292_s7 = scalar_lea.hbm %s1683_s28, 1024  ;;  %s1296_s16 = scalar_lea.hbm %s1776_s5, 2048 }
 0x1b4   : > { %p1293_p0 = scmp.ne.s32.totalorder %s1683_s28, %s1292_s7  ;;  %p1297_p6 = scmp.lt.u32.totalorder %s1683_s28, %s1776_s5 }
 0x1b5   : > { %p1298_p7 = scmp.lt.u32.totalorder %s1296_s16, %s1292_s7  ;;  %p1300_p8 = scmp.lt.u32.totalorder %s1292_s7, %s1683_s28 }
 0x1b6   : > { %p1294_p4 = pnand %p1293_p0, %p1796_p12 }
 0x1b7   : > { %p1299_p2 = por %p1298_p7, %p1297_p6 }
 0x1b8   : > { %p1295_p13 = pneg %p1294_p4 }
 0x1b9   : > { %p1301_p1 = por %p1300_p8, %p1299_p2 }
 0x1bb   : > { %p1302_p10 = pnand %p1301_p1, %p1295_p13 }
 0x1bd   : > { %1305 = shalt.err (!%p1302_p10)
}
 0x1be   : > { %s1406_s12 = smov 256   ;;  %s1407_s27 = smov 16   ;;  %v938_v27 = vld [vmem:[%s1775_s4] ss:$0 sm:$0xff] }
 0x1bf   : > { %1066 = dma.vmem_to_hbm [thread:$0]  (%p1796_p12), %s1685_s17, 1024, %s1683_s28, %s726_s15, %s1406_s12, %s1406_s12, %s1407_s27  }
 0x1c0   : > { %s353_s17 = scalar_lea.vmem [#allocation9], %s925_s30  ;;  %s951_s28 = sshll.u32 %s1388_s24, 9 }
 0x1c1   : > { %s763_s15 = sshll.u32 %s353_s17, 4  ;;  %s1720_s13 = scalar_lea.hbm %s1777_s6, %s951_s28  ;;  %s1722_s15 = int_to_ptr.vmem [resolvable:$true] %s763_s15 }
 0x1c2   : > { %s731_s30 = scalar_lea.sflag [#allocation10], %s1640_s8  ;;  %s1306_s16 = scalar_lea.vmem %s1722_s15, 512 }
 0x1c3   : > { %p1307_p3 = scmp.ne.s32.totalorder %s1722_s15, %s1306_s16  ;;  %s1408_s24 = smov [#allocation9]  }
 0x1c4   : > { %s1310_s19 = sshll.u32 %s1408_s24, 4  ;;  %s1311_s19 = int_to_ptr.vmem [resolvable:$false] %s1310_s19 }
 0x1c5   : > { %p1308_p5 = pnand %p1307_p3, %p1796_p12  ;;  %s1312_s14 = scalar_lea.vmem %s1311_s19, 1024 }
 0x1c6   : > { %p1313_p11 = scmp.lt.s32.totalorder %s1722_s15, %s1311_s19  ;;  %p1314_p0 = scmp.lt.s32.totalorder %s1312_s14, %s1306_s16 }
 0x1c7   : > { %p1309_p9 = pneg %p1308_p5 }
 0x1c8   : > { %p1315_p4 = por %p1314_p0, %p1313_p11 }
 0x1ca   : > { %p1316_p13 = pnand %p1315_p4, %p1309_p9 }
 0x276   : > { %v656_v28 = vpop.f32.mrb[0].mxu1 }
 0x277   : > { %v713_v29 = vadd.f32 %v938_v27, %v656_v28  ;;  %v658_v30 = vpop.f32.mrb[1].mxu1 }
 0x279   : > { %1184 = vtanh.f32 %v713_v29 }
 0x27a   : > { %v661_v31 = vpop.f32.mrb[2].mxu1 }
 0x27b   : > { %v714_v32 = vadd.f32 %v938_v27, %v661_v31  ;;  %v663_v33 = vpop.f32.mrb[3].mxu1 }
 0x27d   : > { %1186 = vtanh.f32 %v714_v32 }
 0x27e   : > { %v666_v34 = vpop.f32.mrb[4].mxu1 }
 0x27f   : > { %v715_v35 = vadd.f32 %v938_v27, %v666_v34  ;;  %v668_v36 = vpop.f32.mrb[5].mxu1 }
 0x281   : > { %1188 = vtanh.f32 %v715_v35 }
 0x283   : > { %v1185_v37 = vpop.eup %1184 }
 0x284   : > { %721 = vst [vmem:[%s353_s17] sm:$0xff] %v1185_v37  ;;  %v671_v38 = vpop.f32.mrb[6].mxu1 }
 0x285   : > { %v716_v39 = vadd.f32 %v938_v27, %v671_v38  ;;  %v673_v40 = vpop.f32.mrb[7].mxu1 }
 0x287   : > { %v1187_v41 = vpop.eup %1186  ;;  %1190 = vtanh.f32 %v716_v39 }
 0x288   : > { %722 = vst [vmem:[%s353_s17 + $0x8] sm:$0xff] %v1187_v41 }
 0x28b   : > { %v1189_v42 = vpop.eup %1188 }
 0x28c   : > { %723 = vst [vmem:[%s353_s17 + $0x10] sm:$0xff] %v1189_v42 }
 0x291   : > { %v1191_v43 = vpop.eup %1190 }
 0x292   : > { %724 = vst [vmem:[%s353_s17 + $0x18] sm:$0xff] %v1191_v43 }
 0x293   : > { %1319 = shalt.err (!%p1316_p13)
}
 0x294   : > { %s1320_s12 = scalar_lea.hbm %s1720_s13, 512  ;;  %s1324_s29 = scalar_lea.hbm %s1777_s6, 1024 }
 0x295   : > { %p1321_p6 = scmp.ne.s32.totalorder %s1720_s13, %s1320_s12  ;;  %p1325_p8 = scmp.lt.u32.totalorder %s1720_s13, %s1777_s6 }
 0x296   : > { %p1326_p1 = scmp.lt.u32.totalorder %s1324_s29, %s1320_s12  ;;  %p1328_p3 = scmp.lt.u32.totalorder %s1320_s12, %s1720_s13 }
 0x297   : > { %p1322_p7 = pnand %p1321_p6, %p1796_p12 }
 0x298   : > { %p1327_p10 = por %p1326_p1, %p1325_p8 }
 0x299   : > { %p1323_p2 = pneg %p1322_p7 }
 0x29a   : > { %p1329_p5 = por %p1328_p3, %p1327_p10 }
 0x29c   : > { %p1330_p9 = pnand %p1329_p5, %p1323_p2 }
 0x29e   : > { %1333 = shalt.err (!%p1330_p9)
}
 0x29f   : > { %s1409_s7 = smov 128   ;;  %s1410_s9 = smov 8  }
 0x2a0   : > { %1067 = dma.vmem_to_hbm [thread:$0]  (%p1796_p12), %s1722_s15, 512, %s1720_s13, %s731_s30, %s1409_s7, %s1409_s7, %s1410_s9  }
 0x2a1 PF: > { %s1797_s16 = sld [smem:[#allocation15_spill]]  ;;  %s778_s24 = sand.u32 1, %s1376_s21  }
 0x2a2   : > { %p1799_p0 = scmp.ge.s32.totalorder %s1396_s26, 2  ;;  %s779_s19 = scalar_lea.sflag [#allocation4], %s778_s24 }
 0x2a7   : > { %p1798_p11 = scmp.ne.s32.totalorder %s1797_s16, 0 }
 0x2a9   : > { %p1082_p4 = pnand %p1799_p0, %p1798_p11 }
 0x2ab   : > { %1367 = dma.done.wait (!%p1082_p4), %s779_s19, 1024  }
 0x2ac   : > { %1369 = vsyncadd (!%p1082_p4), %s779_s19, 4294966272  ;;  %s788_s14 = scalar_lea.sflag [#allocation10], %s778_s24 }
 0x2ad   : > { %1371 = dma.done.wait (!%p1082_p4), %s788_s14, 512  }
 0x2ae   : > { %1373 = vsyncadd (!%p1082_p4), %s788_s14, 4294966784  ;;  %s27_s26 = sadd.s32 1, %s1396_s26   ;;  %s1800_s21 = smov %s1380_s22 }
 0x2af   : > { %p24_p13 = scmp.ge.s32.totalorder %s27_s26, 4   ;;  %s1801_s22 = smov %s1384_s23 }
 0x2b0   : > { %s1802_s23 = smov %s1591_s11  ;;  %s1803_s24 = smov %s1392_s25 }
 0x2b1   : > { %s1804_s25 = smov %s1806_s18  ;;  %26 = sbr.rel (!%p24_p13) target bundleno = 9 (0x9), region = 127 }
 0x2b8   :  { %793 = vsyncpa [#allocation3], 1 }
 0x2b9   :  { %795 = vsyncpa [#allocation3 + $0x1], 1 }
 0x2ba   :  { %796 = vsyncpa [#allocation6], 1 }
 0x2bb   :  { %797 = vsyncpa [#allocation4], 1 }
 0x2bc   :  { %799 = vsyncpa [#allocation4 + $0x1], 1 }
 0x2bd   :  { %800 = vsyncpa [#allocation10], 1 }
 0x2be   :  { %802 = vsyncpa [#allocation10 + $0x1], 1 }

// kernel: tpu_custom_call.1
= control target key start
LH: loop header
LB: loop body
LE: loop exit
PB: predicated region body
PF: predicated region fallthrough
CT: control target
= control target key end

     0   :  { %12 = vsyncpa [#allocation3], 0  ;;  %s1771_s0 = inlined_call_operand.hbm [shape: f32[64,128], index: 0, kind: input, shape index: {}]   ;;  %s1772_s1 = inlined_call_operand.hbm [shape: f32[256,128], index: 1, kind: input, shape index: {}]   ;;  %s1773_s2 = inlined_call_operand.vmem [shape: f32[1,256], index: 2, kind: input, shape index: {}]   ;;  %s1774_s3 = inlined_call_operand.hbm [shape: f32[128,256], index: 3, kind: input, shape index: {}]   ;;  %s1775_s4 = inlined_call_operand.vmem [shape: f32[1,128], index: 4, kind: input, shape index: {}]   ;;  %s1776_s5 = inlined_call_operand.hbm [shape: f32[64,256], index: 5, kind: output, shape index: {0}]   ;;  %s1777_s6 = inlined_call_operand.hbm [shape: f32[64,128], index: 6, kind: output, shape index: {1}]  }
   0x1   :  { %14 = vsyncpa [#allocation3 + $0x1], 0 }
   0x2   :  { %15 = vsyncpa [#allocation6], 0 }
   0x3   :  { %16 = vsyncpa [#allocation4], 0 }
   0x4   :  { %18 = vsyncpa [#allocation4 + $0x1], 0 }
   0x5   :  { %19 = vsyncpa [#allocation10], 0 }
   0x6   :  { %21 = vsyncpa [#allocation10 + $0x1], 0  ;;  %s1446_s21 = smov 0   ;;  %s1448_s22 = smov 0  }
   0x7   :  { %s1450_s23 = smov 0   ;;  %s1452_s24 = smov 0  }
   0x8   :  { %s1454_s25 = smov 0   ;;  %s1456_s26 = smov 0  }
   0x9 LB: > { %s914_s27 = sadd.s32 4294967295, %s1396_s26   ;;  %s915_s28 = sadd.s32 4294967294, %s1396_s26   ;;  %s1396_s26 = sphi %s1456_s26, %s27_s26   ;;  %s1392_s25 = sphi %s1454_s25, %s1804_s25   ;;  %s1388_s24 = sphi %s1452_s24, %s1803_s24   ;;  %s1384_s23 = sphi %s1450_s23, %s1802_s23   ;;  %s1380_s22 = sphi %s1448_s22, %s1801_s22   ;;  %s1376_s21 = sphi %s1446_s21, %s1800_s21  }
   0xa   : > { %p59_p0 = scmp.ne.s32.totalorder %s1380_s22, %s1376_s21  ;;  %p1480_p1 = scmp.eq.s32.totalorder %s914_s27, 0 }
   0xb   : > { %p1484_p2 = scmp.eq.s32.totalorder %s914_s27, 1  ;;  %p190_p3 = scmp.eq.s32.totalorder %s915_s28, 1 }
   0xc   : > { %s1784_s29 = scalar_select %p1480_p1, 1, 0 }
   0xd   : > { %p1490_p4 = por %p1480_p1, %p59_p0  ;;  %p916_p5 = scmp.ge.s32.totalorder %s1396_s26, 1 }
   0xe   : > { %p1495_p6 = por %p190_p3, %p59_p0  ;;  %p223_p7 = scmp.lt.s32.totalorder %s1396_s26, 3 }
   0xf   : > { %s1786_s7 = scalar_select %p1490_p4, 1, 0 }
  0x10   : > { %s1787_s8 = scalar_select %p1495_p6, 1, 0 }
  0x11   : > { %p1500_p8 = pnand %p916_p5, %p223_p7  ;;  %s1398_s10 = smov [#allocation5]  }
  0x12   : > { %1788 = sst [smem:[#allocation15_spill]] %s1787_s8  ;;  %s238_s11 = sshll.u32 %s1398_s10, 4  ;;  %s1504_s11 = int_to_ptr.vmem [resolvable:$true] %s238_s11 }
  0x13   : > { %p1070_p9 = pneg %p1500_p8  ;;  %s1399_s13 = smov [#allocation7]  }
  0x14   : > { %s262_s14 = sshll.u32 %s1399_s13, 4  ;;  %s1192_s17 = scalar_lea.hbm %s1772_s1, 4096  ;;  %s1515_s14 = int_to_ptr.vmem [resolvable:$true] %s262_s14 }
  0x15   : > { %p1511_p11 = pnand %p1070_p9, %p1480_p1  ;;  %p1193_p12 = scmp.ne.s32.totalorder %s1772_s1, %s1192_s17 }
  0x16   : > { %p1199_p5 = scmp.lt.u32.totalorder %s1192_s17, %s1772_s1 }
  0x17   : > { %p1194_p13 = pneg %p1511_p11 }
  0x19   : > { %p1195_p0 = pnand %p1194_p13, %p1193_p12 }
  0x1b   : > { %p1196_p3 = pneg %p1195_p0 }
  0x1d   : > { %p1201_p7 = pnand %p1199_p5, %p1196_p3 }
  0x1f   : > { %1204 = shalt.err (!%p1201_p7)
}
  0x20   : > { %s1205_s28 = scalar_lea.vmem %s1504_s11, 4096  ;;  %p1213_p1 = scmp.lt.s32.totalorder %s1504_s11, %s1504_s11 }
  0x21   : > { %p1206_p9 = scmp.ne.s32.totalorder %s1504_s11, %s1205_s28  ;;  %p1214_p12 = scmp.lt.s32.totalorder %s1205_s28, %s1205_s28 }
  0x23   : > { %p1208_p10 = pnand %p1206_p9, %p1194_p13  ;;  %p1215_p0 = por %p1214_p12, %p1213_p1 }
  0x25   : > { %p1209_p6 = pneg %p1208_p10 }
  0x27   : > { %p1216_p4 = pnand %p1215_p0, %p1209_p6 }
  0x29   : > { %1219 = shalt.err (!%p1216_p4)
}
  0x2a   : > { %s1782_s10 = smov 128   ;;  %s1401_s13 = smov 8  }
  0x2b   : > { %1073 = dma.hbm_to_vmem [thread:$0]  (!%p1511_p11), %s1772_s1, 4096, %s1504_s11, [#allocation6], %s1782_s10, %s1782_s10, %s1401_s13  }
  0x2c   : > { %s1220_s19 = scalar_lea.hbm %s1774_s3, 4096 }
  0x2d   : > { %p1221_p1 = scmp.ne.s32.totalorder %s1774_s3, %s1220_s19  ;;  %p1227_p10 = scmp.lt.u32.totalorder %s1220_s19, %s1774_s3 }
  0x2f   : > { %p1223_p4 = pnand %p1221_p1, %p1194_p13 }
  0x31   : > { %p1224_p6 = pneg %p1223_p4 }
  0x33   : > { %p1229_p3 = pnand %p1227_p10, %p1224_p6 }
  0x35   : > { %1232 = shalt.err (!%p1229_p3)
}
  0x36   : > { %s1233_s11 = scalar_lea.vmem %s1515_s14, 4096  ;;  %p1241_p12 = scmp.lt.s32.totalorder %s1515_s14, %s1515_s14 }
  0x37   : > { %p1234_p5 = scmp.ne.s32.totalorder %s1515_s14, %s1233_s11  ;;  %p1242_p0 = scmp.lt.s32.totalorder %s1233_s11, %s1233_s11 }
  0x39   : > { %p1236_p7 = pnand %p1234_p5, %p1194_p13  ;;  %p1243_p1 = por %p1242_p0, %p1241_p12 }
  0x3b   : > { %p1237_p9 = pneg %p1236_p7 }
  0x3d   : > { %p1244_p4 = pnand %p1243_p1, %p1237_p9 }
  0x3f   : > { %1247 = shalt.err (!%p1244_p4)
}
  0x40   : > { %s1402_s8 = smov 256   ;;  %s1403_s15 = smov 16  }
  0x41   : > { %1076 = dma.hbm_to_vmem [thread:$0]  (!%p1511_p11), %s1774_s3, 4096, %s1515_s14, [#allocation6], %s1402_s8, %s1402_s8, %s1403_s15  }
  0x42   : > { %s39_s18 = sadd.s32 1, %s1392_s25  ;;  %s46_s19 = sadd.s32 1, %s1384_s23 }
  0x43   : > { %p41_p13 = scmp.ge.s32.totalorder %s39_s18, 2  ;;  %p53_p6 = scmp.ne.s32.totalorder %s1384_s23, %s1380_s22 }
  0x44   : > { %p54_p10 = scmp.eq.s32.totalorder %s1396_s26, 0  ;;  %p1090_p3 = scmp.lt.s32.totalorder %s1396_s26, 2 }
  0x45   : > { %s1806_s18 = smov (%p41_p13, %s39_s18), 0  ;;  %p1582_p7 = por %p1484_p2, %p53_p6 }
  0x46   : > { %p55_p5 = por %p54_p10, %p53_p6  ;;  %s43_s12 = ssub.s32 %s1392_s25, %s1806_s18 }
  0x47   : > { %s1791_s20 = scalar_select %p1582_p7, 1, 0 }
  0x48   : > { %s279_s27 = sand.u32 1, %s1384_s23   ;;  %p44_p9 = scmp.eq.s32.totalorder %s43_s12, 0 }
  0x49   : > { %s921_s14 = sshll.u32 %s279_s27, 5  ;;  %s948_s28 = sshll.u32 %s1392_s25, 9 }
  0x4a   : > { %s1591_s11 = scalar_select %p44_p9, %s1384_s23, %s46_s19  }
  0x4b   : > { %s1596_s16 = scalar_lea.hbm %s1771_s0, %s948_s28  ;;  %s283_s30 = scalar_lea.vmem [#allocation2], %s921_s14 }
  0x4c   : > { %s290_s17 = sshll.u32 %s283_s30, 4  ;;  %p1600_p2 = pnand %p1090_p3, %p55_p5  ;;  %s1604_s17 = int_to_ptr.vmem [resolvable:$true] %s290_s17 }
  0x4d   : > { %s1606_s19 = scalar_lea.sflag [#allocation3], %s279_s27  ;;  %s1248_s12 = scalar_lea.hbm %s1596_s16, 512 }
  0x4e   : > { %p1249_p11 = scmp.ne.s32.totalorder %s1596_s16, %s1248_s12  ;;  %p1250_p12 = pneg %p1600_p2 }
  0x4f   : > { %s1253_s8 = scalar_lea.hbm %s1771_s0, 1024  ;;  %p1254_p4 = scmp.lt.u32.totalorder %s1596_s16, %s1771_s0 }
  0x50   : > { %p1251_p0 = pnand %p1250_p12, %p1249_p11  ;;  %p1255_p13 = scmp.lt.u32.totalorder %s1253_s8, %s1248_s12 }
  0x51   : > { %p1257_p10 = scmp.lt.u32.totalorder %s1248_s12, %s1596_s16 }
  0x52   : > { %p1252_p1 = pneg %p1251_p0  ;;  %p1256_p6 = por %p1255_p13, %p1254_p4 }
  0x54   : > { %p1258_p3 = por %p1257_p10, %p1256_p6 }
  0x56   : > { %p1259_p5 = pnand %p1258_p3, %p1252_p1 }
  0x58   : > { %1262 = shalt.err (!%p1259_p5)
}
  0x59   : > { %s1263_s27 = scalar_lea.vmem %s1604_s17, 512  ;;  %s1404_s14 = smov [#allocation2]  }
  0x5a   : > { %p1264_p9 = scmp.ne.s32.totalorder %s1604_s17, %s1263_s27  ;;  %s1268_s28 = sshll.u32 %s1404_s14, 4  ;;  %s1269_s28 = int_to_ptr.vmem [resolvable:$false] %s1268_s28 }
  0x5b   : > { %s1270_s15 = scalar_lea.vmem %s1269_s28, 1024  ;;  %p1271_p7 = scmp.lt.s32.totalorder %s1604_s17, %s1269_s28 }
  0x5c   : > { %p1266_p11 = pnand %p1264_p9, %p1250_p12  ;;  %p1272_p4 = scmp.lt.s32.totalorder %s1270_s15, %s1263_s27 }
  0x5e   : > { %p1267_p0 = pneg %p1266_p11  ;;  %p1273_p13 = por %p1272_p4, %p1271_p7 }
  0x60   : > { %p1274_p6 = pnand %p1273_p13, %p1267_p0 }
  0x62   : > { %1277 = shalt.err (!%p1274_p6)
}
  0x63   : > { %s1793_s12 = smov 128   ;;  %302 = sbr.rel (%p1500_p8) target bundleno = 673 (0x2a1), region = 40 }
  0x64   : > { %1080 = dma.hbm_to_vmem [thread:$0]  (!%p1600_p2), %s1596_s16, 512, %s1604_s17, %s1606_s19, %s1793_s12, %s1793_s12, %s1401_s13  }
  0x65   : > { %s1640_s8 = sand.u32 (!%p1500_p8), 1, %s1380_s22   ;;  %p1794_p7 = scmp.ne.s32.totalorder (!%p1500_p8), %s1786_s7, 0 }
  0x66   : > { %s925_s30 = sshll.u32 (!%p1500_p8), %s1640_s8, 5  ;;  %s305_s27 = scalar_lea.sflag (!%p1500_p8), [#allocation3], %s1640_s8 }
  0x67   : > { %s1646_s10 = scalar_lea.vmem (!%p1500_p8), [#allocation2], %s925_s30 }
  0x6a   : > { %1359 = dma.done.wait (%p1794_p7), %s305_s27, 512  }
  0x6b   : > { %1361 = vsyncadd (%p1794_p7), %s305_s27, 4294966784  ;;  %p1795_p2 = scmp.ne.s32.totalorder %s1784_s29, 0 }
  0x6d   : > { %1363 = dma.done.wait (%p1795_p2), [#allocation6], 8192  }
  0x6e   : > { %1365 = vsyncadd (%p1795_p2), [#allocation6], 4294959104  ;;  %v385_v0 = vld [vmem:[#allocation5 + $0x80] sm:$0xff]  ;;  %v386_v1 = vld [vmem:[#allocation5 + $0x88] sm:$0xff]  ;;  %s928_s9 = sshll.u32 %s1640_s8, 6  ;;  %s950_s16 = sshll.u32 %s1388_s24, 10 }
  0x6f   : > { %v369_v2 = vld [vmem:[#allocation5] sm:$0xff]  ;;  %v992_v3 = vpack.c.bf16 %v386_v1, %v385_v0  ;;  %v370_v4 = vld [vmem:[#allocation5 + $0x8] sm:$0xff]  ;;  %v387_v5 = vld [vmem:[#allocation5 + $0x90] sm:$0xff]  ;;  %s1668_s13 = scalar_lea.vmem [#allocation8], %s928_s9  ;;  %s1683_s28 = scalar_lea.hbm %s1776_s5, %s950_s16 }
  0x70   : > { %v388_v6 = vld [vmem:[#allocation5 + $0x98] sm:$0xff]  ;;  %v994_v7 = vpack.c.bf16 %v370_v4, %v369_v2  ;;  %v371_v9 = vld [vmem:[#allocation5 + $0x10] sm:$0xff]  ;;  %v389_v11 = vld [vmem:[#allocation5 + $0xa0] sm:$0xff]  ;;  %s747_s17 = sshll.u32 %s1668_s13, 4  ;;  %s726_s15 = scalar_lea.sflag [#allocation4], %s1640_s8  ;;  %s1685_s17 = int_to_ptr.vmem [resolvable:$true] %s747_s17 }
  0x71   : > { %v996_v8 = vpack.c.bf16 %v388_v6, %v387_v5  ;;  %993 = vmatprep.subr.bf16.mxu0 %v992_v3  ;;  %v372_v10 = vld [vmem:[#allocation5 + $0x18] sm:$0xff]  ;;  %v390_v12 = vld [vmem:[#allocation5 + $0xa8] sm:$0xff]  ;;  %v1657_v15 = vld [vmem:[%s1646_s10] sm:$0xff]  ;;  %s1278_s12 = scalar_lea.vmem %s1685_s17, 1024  ;;  %p1796_p12 = scmp.ne.s32.totalorder %s1791_s20, 0 }
  0x72   : > { %995 = vmatpush3.bf16.xpose.msra.mxu0 %v994_v7  ;;  %v998_v13 = vpack.c.bf16 %v372_v10, %v371_v9  ;;  %v1000_v14 = vpack.c.bf16 %v390_v12, %v389_v11  ;;  %v373_v16 = vld [vmem:[#allocation5 + $0x20] sm:$0xff]  ;;  %v374_v17 = vld [vmem:[#allocation5 + $0x28] sm:$0xff]  ;;  %984 = vmatprep.mubr.f32.mxu0 %v1657_v15  ;;  %v404_v19 = vld [vmem:[#allocation7 + $0x18] sm:$0xff]  ;;  %p1279_p8 = scmp.ne.s32.totalorder %s1685_s17, %s1278_s12  ;;  %s1405_s27 = smov [#allocation8]  }
  0x73   : > { %997 = vmatprep.subr.bf16.mxu0 %v996_v8  ;;  %v402_v18 = vld [vmem:[#allocation7 + $0x8] sm:$0xff]  ;;  %v401_v20 = vld [vmem:[#allocation7] sm:$0xff]  ;;  %v403_v22 = vld [vmem:[#allocation7 + $0x10] sm:$0xff]  ;;  %v1002_v29 = vpack.c.bf16 %v374_v17, %v373_v16 }
  0x74   : > { %v1024_v21 = vpack.c.bf16 %v404_v19, %v402_v18  ;;  %v406_v23 = vld [vmem:[#allocation7 + $0x28] sm:$0xff]  ;;  %v408_v24 = vld [vmem:[#allocation7 + $0x38] sm:$0xff]  ;;  %v391_v25 = vld [vmem:[#allocation5 + $0xb0] sm:$0xff]  ;;  %v1026_v27 = vpack.c.bf16 %v403_v22, %v401_v20  ;;  %p1280_p1 = pnand %p1279_p8, %p1796_p12 }
  0x75   : > { %v392_v26 = vld [vmem:[#allocation5 + $0xb8] sm:$0xff]  ;;  %v1028_v28 = vpack.c.bf16 %v408_v24, %v406_v23  ;;  %v405_v31 = vld [vmem:[#allocation7 + $0x20] sm:$0xff]  ;;  %v407_v32 = vld [vmem:[#allocation7 + $0x30] sm:$0xff] }
  0x76   : > { %1025 = vmatprep.subr.bf16.mxu1 %v1024_v21  ;;  %v1004_v30 = vpack.c.bf16 %v392_v26, %v391_v25  ;;  %v410_v33 = vld [vmem:[#allocation7 + $0x48] sm:$0xff]  ;;  %v412_v34 = vld [vmem:[#allocation7 + $0x58] sm:$0xff]  ;;  %v1030_v35 = vpack.c.bf16 %v407_v32, %v405_v31  ;;  %v375_v36 = vld [vmem:[#allocation5 + $0x30] sm:$0xff]  ;;  %p1281_p10 = pneg %p1280_p1 }
  0x77   : > { %1027 = vmatpush1.bf16.xpose.msra.mxu1 %v1026_v27  ;;  %v376_v37 = vld [vmem:[#allocation5 + $0x38] sm:$0xff]  ;;  %v1032_v38 = vpack.c.bf16 %v412_v34, %v410_v33  ;;  %v393_v39 = vld [vmem:[#allocation5 + $0xc0] sm:$0xff]  ;;  %v394_v40 = vld [vmem:[#allocation5 + $0xc8] sm:$0xff] }
  0x78   : > { %1029 = vmatprep.subr.bf16.mxu1 %v1028_v28  ;;  %v1006_v41 = vpack.c.bf16 %v376_v37, %v375_v36  ;;  %v1008_v42 = vpack.c.bf16 %v394_v40, %v393_v39  ;;  %v409_v43 = vld [vmem:[#allocation7 + $0x40] sm:$0xff]  ;;  %v411_v44 = vld [vmem:[#allocation7 + $0x50] sm:$0xff]  ;;  %v414_v45 = vld [vmem:[#allocation7 + $0x68] sm:$0xff]  ;;  %v435_v36 = vlaneseq }
  0x79   : > { %v416_v46 = vld [vmem:[#allocation7 + $0x78] sm:$0xff]  ;;  %v1034_v47 = vpack.c.bf16 %v411_v44, %v409_v43  ;;  %v377_v48 = vld [vmem:[#allocation5 + $0x40] sm:$0xff]  ;;  %v378_v49 = vld [vmem:[#allocation5 + $0x48] sm:$0xff] }
  0x7a   : > { %999 = vmatpush3.bf16.xpose.msra.mxu0 %v998_v13  ;;  %v1036_v50 = vpack.c.bf16 %v416_v46, %v414_v45  ;;  %v395_v51 = vld [vmem:[#allocation5 + $0xd0] sm:$0xff]  ;;  %v396_v52 = vld [vmem:[#allocation5 + $0xd8] sm:$0xff]  ;;  %v1010_v53 = vpack.c.bf16 %v378_v49, %v377_v48  ;;  %v413_v55 = vld [vmem:[#allocation7 + $0x60] sm:$0xff]  ;;  %v436_v37 = vshrl.u32 %v435_v36, 7 }
  0x7b   : > { %1001 = vmatprep.subr.bf16.mxu0 %v1000_v14  ;;  %v1012_v54 = vpack.c.bf16 %v396_v52, %v395_v51  ;;  %v415_v56 = vld [vmem:[#allocation7 + $0x70] sm:$0xff]  ;;  %v418_v57 = vld [vmem:[#allocation7 + $0x88] sm:$0xff]  ;;  %v420_v58 = vld [vmem:[#allocation7 + $0x98] sm:$0xff] }
  0x7c   : > { %v1038_v59 = vpack.c.bf16 %v415_v56, %v413_v55  ;;  %v379_v60 = vld [vmem:[#allocation5 + $0x50] sm:$0xff]  ;;  %v380_v61 = vld [vmem:[#allocation5 + $0x58] sm:$0xff]  ;;  %v1040_v62 = vpack.c.bf16 %v420_v58, %v418_v57  ;;  %v397_v63 = vld [vmem:[#allocation5 + $0xe0] sm:$0xff]  ;;  %v441_v40 = vsub.s32 1, %v436_v37 }
  0x7d   : > { %v398_v0 = vld [vmem:[#allocation5 + $0xe8] sm:$0xff]  ;;  %v1014_v1 = vpack.c.bf16 %v380_v61, %v379_v60  ;;  %v381_v3 = vld [vmem:[#allocation5 + $0x60] sm:$0xff]  ;;  %v399_v5 = vld [vmem:[#allocation5 + $0xf0] sm:$0xff] }
  0x7e   : > { %v1016_v2 = vpack.c.bf16 %v398_v0, %v397_v63  ;;  %v382_v4 = vld [vmem:[#allocation5 + $0x68] sm:$0xff]  ;;  %v400_v6 = vld [vmem:[#allocation5 + $0xf8] sm:$0xff]  ;;  %v383_v9 = vld [vmem:[#allocation5 + $0x70] sm:$0xff] }
  0x7f   : > { %1031 = vmatpush1.bf16.xpose.msra.mxu1 %v1030_v35  ;;  %v1018_v7 = vpack.c.bf16 %v382_v4, %v381_v3  ;;  %v1020_v8 = vpack.c.bf16 %v400_v6, %v399_v5  ;;  %v384_v10 = vld [vmem:[#allocation5 + $0x78] sm:$0xff]  ;;  %v366_v12 = vld [vmem:[%s1646_s10 + $0x8] sm:$0xff]  ;;  %v367_v13 = vld [vmem:[%s1646_s10 + $0x10] sm:$0xff] }
  0x80   : > { %1033 = vmatprep.subr.bf16.mxu1 %v1032_v38  ;;  %v1022_v11 = vpack.c.bf16 %v384_v10, %v383_v9  ;;  %v368_v14 = vld [vmem:[%s1646_s10 + $0x18] sm:$0xff]  ;;  %v417_v16 = vld [vmem:[#allocation7 + $0x80] sm:$0xff]  ;;  %v419_v17 = vld [vmem:[#allocation7 + $0x90] sm:$0xff]  ;;  %v437_v38 = vsub.s32 0, %v436_v37  ;;  %s1282_s10 = sshll.u32 %s1405_s27, 4  ;;  %s1283_s10 = int_to_ptr.vmem [resolvable:$false] %s1282_s10 }
  0x81   : > { %v1042_v18 = vpack.c.bf16 %v419_v17, %v417_v16  ;;  %v422_v19 = vld [vmem:[#allocation7 + $0xa8] sm:$0xff]  ;;  %v424_v20 = vld [vmem:[#allocation7 + $0xb8] sm:$0xff]  ;;  %v421_v22 = vld [vmem:[#allocation7 + $0xa0] sm:$0xff]  ;;  %s1284_s29 = scalar_lea.vmem %s1283_s10, 2048  ;;  %p1285_p3 = scmp.lt.s32.totalorder %s1685_s17, %s1283_s10 }
  0x82   : > { %1003 = vmatpush3.bf16.xpose.msra.mxu0 %v1002_v29  ;;  %v1044_v21 = vpack.c.bf16 %v424_v20, %v422_v19  ;;  %v423_v23 = vld [vmem:[#allocation7 + $0xb0] sm:$0xff]  ;;  %v428_v25 = vld [vmem:[#allocation7 + $0xd8] sm:$0xff]  ;;  %v425_v27 = vld [vmem:[#allocation7 + $0xc0] sm:$0xff]  ;;  %p1286_p5 = scmp.lt.s32.totalorder %s1284_s29, %s1278_s12 }
  0x83   : > { %1005 = vmatprep.subr.bf16.mxu0 %v1004_v30  ;;  %v1046_v24 = vpack.c.bf16 %v423_v23, %v421_v22  ;;  %v427_v28 = vld [vmem:[#allocation7 + $0xd0] sm:$0xff]  ;;  %v430_v30 = vld [vmem:[#allocation7 + $0xe8] sm:$0xff]  ;;  %v432_v31 = vld [vmem:[#allocation7 + $0xf8] sm:$0xff] }
  0x84   : > { %v1050_v29 = vpack.c.bf16 %v427_v28, %v425_v27  ;;  %v1052_v32 = vpack.c.bf16 %v432_v31, %v430_v30  ;;  %v429_v33 = vld [vmem:[#allocation7 + $0xe0] sm:$0xff]  ;;  %v431_v34 = vld [vmem:[#allocation7 + $0xf0] sm:$0xff]  ;;  %p1287_p9 = por %p1286_p5, %p1285_p3 }
  0x85   : > { %v1054_v35 = vpack.c.bf16 %v431_v34, %v429_v33  ;;  %v433_v39 = vld [vmem:[%s1773_s2] sm:$0x3] }
  0x86   : > { %p1288_p11 = pnand %p1287_p9, %p1281_p10 }
  0x87   : > { %1035 = vmatpush1.bf16.xpose.msra.mxu1 %v1034_v47 }
  0x88   : > { %1037 = vmatprep.subr.bf16.mxu1 %v1036_v50 }
  0x8a   : > { %1007 = vmatpush3.bf16.xpose.msra.mxu0 %v1006_v41  ;;  %v438_v41 = vrot.slane %v433_v39, %v437_v38 }
  0x8b   : > { %1009 = vmatprep.subr.bf16.mxu0 %v1008_v42  ;;  %v442_v42 = vrot.slane %v433_v39, %v441_v40 }
  0x8f   : > { %1039 = vmatpush1.bf16.xpose.msra.mxu1 %v1038_v59 }
  0x90   : > { %1041 = vmatprep.subr.bf16.mxu1 %v1040_v62 }
  0x92   : > { %1011 = vmatpush3.bf16.xpose.msra.mxu0 %v1010_v53 }
  0x93   : > { %1013 = vmatprep.subr.bf16.mxu0 %v1012_v54 }
  0x97   : > { %1043 = vmatpush1.bf16.xpose.msra.mxu1 %v1042_v18 }
  0x98   : > { %1045 = vmatprep.subr.bf16.mxu1 %v1044_v21 }
  0x9a   : > { %1015 = vmatpush3.bf16.xpose.msra.mxu0 %v1014_v1 }
  0x9b   : > { %1017 = vmatprep.subr.bf16.mxu0 %v1016_v2 }
  0x9f   : > { %1047 = vmatpush1.bf16.xpose.msra.mxu1 %v1046_v24 }
  0xa2   : > { %1019 = vmatpush3.bf16.xpose.msra.mxu0 %v1018_v7 }
  0xa3   : > { %1021 = vmatprep.subr.bf16.mxu0 %v1020_v8 }
  0xaa   : > { %1023 = vmatpush3.bf16.xpose.msra.mxu0 %v1022_v11 }
  0xb1   : > { %985 = vmatmul.mubr.f32.vlgmr.msra.gmra.mrb[0].mxu0 %v1657_v15  ;;  %v426_v15 = vld [vmem:[#allocation7 + $0xc8] sm:$0xff] }
  0xb2   : > { %986 = vmatprep.mubr.f32.mxu0 %v366_v12  ;;  %v1048_v26 = vpack.c.bf16 %v428_v25, %v426_v15 }
  0xb4   : > { %1049 = vmatprep.subr.bf16.mxu1 %v1048_v26 }
  0xb5   : > { %987 = vmatmul.mubr.f32.gmra.mrb[2].mxu0 %v366_v12  ;;  %1051 = vmatpush1.bf16.xpose.msra.mxu1 %v1050_v29 }
  0xb6   : > { %988 = vmatprep.mubr.f32.mxu0 %v367_v13  ;;  %1053 = vmatprep.subr.bf16.mxu1 %v1052_v32 }
  0xb9   : > { %989 = vmatmul.mubr.f32.gmra.mrb[4].mxu0 %v367_v13 }
  0xba   : > { %990 = vmatprep.mubr.f32.mxu0 %v368_v14 }
  0xbd   : > { %991 = vmatmul.mubr.f32.gmra.mrb[6].mxu0 %v368_v14  ;;  %1055 = vmatpush1.bf16.xpose.msra.mxu1 %v1054_v35 }
 0x184   : > { %v511_v43 = vpop.f32.mrb[0].mxu0 }
 0x185   : > { %v512_v44 = vadd.f32 %v511_v43, %v438_v41  ;;  %v513_v45 = vpop.f32.mrb[1].mxu0 }
 0x186   : > { %v514_v46 = vadd.f32 %v513_v45, %v442_v42 }
 0x187   : > { %v930_v47 = vmul.f32 -1.442695, %v512_v44 }
 0x188   : > { %v931_v48 = vmul.f32 -1.442695, %v514_v46  ;;  %v517_v49 = vpop.f32.mrb[2].mxu0 }
 0x189   : > { %1152 = vpow2.f32 %v930_v47  ;;  %v518_v50 = vadd.f32 %v517_v49, %v438_v41  ;;  %v519_v51 = vpop.f32.mrb[3].mxu0 }
 0x18a   : > { %1154 = vpow2.f32 %v931_v48  ;;  %v520_v52 = vadd.f32 %v519_v51, %v442_v42 }
 0x18b   : > { %v932_v53 = vmul.f32 -1.442695, %v518_v50 }
 0x18c   : > { %v933_v54 = vmul.f32 -1.442695, %v520_v52  ;;  %v523_v55 = vpop.f32.mrb[4].mxu0 }
 0x18d   : > { %1156 = vpow2.f32 %v932_v53  ;;  %v524_v56 = vadd.f32 %v523_v55, %v438_v41  ;;  %v525_v57 = vpop.f32.mrb[5].mxu0 }
 0x18e   : > { %1158 = vpow2.f32 %v933_v54  ;;  %v526_v58 = vadd.f32 %v525_v57, %v442_v42 }
 0x18f   : > { %v934_v59 = vmul.f32 -1.442695, %v524_v56 }
 0x190   : > { %v935_v60 = vmul.f32 -1.442695, %v526_v58  ;;  %v529_v61 = vpop.f32.mrb[6].mxu0 }
 0x191   : > { %1160 = vpow2.f32 %v934_v59  ;;  %v530_v62 = vadd.f32 %v529_v61, %v438_v41  ;;  %v531_v63 = vpop.f32.mrb[7].mxu0 }
 0x192   : > { %1162 = vpow2.f32 %v935_v60  ;;  %v532_v0 = vadd.f32 %v531_v63, %v442_v42 }
 0x193   : > { %v1153_v1 = vpop.eup %1152  ;;  %v936_v2 = vmul.f32 -1.442695, %v530_v62 }
 0x194   : > { %v1155_v3 = vpop.eup %1154  ;;  %v558_v4 = vadd.f32 1.0, %v1153_v1  ;;  %v937_v5 = vmul.f32 -1.442695, %v532_v0 }
 0x195   : > { %v559_v6 = vadd.f32 1.0, %v1155_v3  ;;  %1164 = vpow2.f32 %v936_v2 }
 0x196   : > { %1166 = vrcp.f32 %v558_v4 }
 0x197   : > { %v1157_v7 = vpop.eup %1156  ;;  %1168 = vrcp.f32 %v559_v6 }
 0x198   : > { %v1159_v8 = vpop.eup %1158  ;;  %v560_v9 = vadd.f32 1.0, %v1157_v7  ;;  %1170 = vpow2.f32 %v937_v5 }
 0x199   : > { %v561_v10 = vadd.f32 1.0, %v1159_v8 }
 0x19a   : > { %1172 = vrcp.f32 %v560_v9 }
 0x19b   : > { %v1161_v11 = vpop.eup %1160  ;;  %1174 = vrcp.f32 %v561_v10 }
 0x19c   : > { %v1163_v12 = vpop.eup %1162  ;;  %v562_v13 = vadd.f32 1.0, %v1161_v11 }
 0x19d   : > { %v563_v14 = vadd.f32 1.0, %v1163_v12 }
 0x19e   : > { %1176 = vrcp.f32 %v562_v13 }
 0x19f   : > { %v1165_v16 = vpop.eup %1164  ;;  %1178 = vrcp.f32 %v563_v14 }
 0x1a0   : > { %v1167_v17 = vpop.eup %1166  ;;  %v564_v18 = vadd.f32 1.0, %v1165_v16 }
 0x1a1   : > { %v1169_v19 = vpop.eup %1168  ;;  %582 = vst [vmem:[%s1668_s13] sm:$0xff] %v1167_v17 }
 0x1a2   : > { %v1171_v20 = vpop.eup %1170  ;;  %583 = vst [vmem:[%s1668_s13 + $0x8] sm:$0xff] %v1169_v19  ;;  %1180 = vrcp.f32 %v564_v18  ;;  %654 = vmatprep.mubr.f32.mxu1 %v1169_v19 }
 0x1a3   : > { %v565_v21 = vadd.f32 1.0, %v1171_v20  ;;  %655 = vmatmul.mubr.f32.vlgmr.msra.gmra.mrb[0].mxu1 %v1167_v17 }
 0x1a4   : > { %v1173_v22 = vpop.eup %1172 }
 0x1a5   : > { %v1175_v23 = vpop.eup %1174  ;;  %584 = vst [vmem:[%s1668_s13 + $0x10] sm:$0xff] %v1173_v22  ;;  %1182 = vrcp.f32 %v565_v21 }
 0x1a6   : > { %585 = vst [vmem:[%s1668_s13 + $0x18] sm:$0xff] %v1175_v23  ;;  %659 = vmatprep.mubr.f32.mxu1 %v1175_v23 }
 0x1a7   : > { %660 = vmatmul.mubr.f32.gmra.mrb[2].mxu1 %v1173_v22 }
 0x1a8   : > { %v1177_v24 = vpop.eup %1176 }
 0x1a9   : > { %v1179_v15 = vpop.eup %1178  ;;  %586 = vst [vmem:[%s1668_s13 + $0x20] sm:$0xff] %v1177_v24 }
 0x1aa   : > { %587 = vst [vmem:[%s1668_s13 + $0x28] sm:$0xff] %v1179_v15  ;;  %664 = vmatprep.mubr.f32.mxu1 %v1179_v15 }
 0x1ab   : > { %665 = vmatmul.mubr.f32.gmra.mrb[4].mxu1 %v1177_v24 }
 0x1ac   : > { %v1181_v25 = vpop.eup %1180 }
 0x1ad   : > { %588 = vst [vmem:[%s1668_s13 + $0x30] sm:$0xff] %v1181_v25 }
 0x1af   : > { %v1183_v26 = vpop.eup %1182 }
 0x1b0   : > { %589 = vst [vmem:[%s1668_s13 + $0x38] sm:$0xff] %v1183_v26  ;;  %669 = vmatprep.mubr.f32.mxu1 %v1183_v26 }
 0x1b1   : > { %670 = vmatmul.mubr.f32.gmra.mrb[6].mxu1 %v1181_v25 }
 0x1b2   : > { %1291 = shalt.err (!%p1288_p11)
}
 0x1b3   : > { %s1292_s7 = scalar_lea.hbm %s1683_s28, 1024  ;;  %s1296_s16 = scalar_lea.hbm %s1776_s5, 2048 }
 0x1b4   : > { %p1293_p0 = scmp.ne.s32.totalorder %s1683_s28, %s1292_s7  ;;  %p1297_p6 = scmp.lt.u32.totalorder %s1683_s28, %s1776_s5 }
 0x1b5   : > { %p1298_p7 = scmp.lt.u32.totalorder %s1296_s16, %s1292_s7  ;;  %p1300_p8 = scmp.lt.u32.totalorder %s1292_s7, %s1683_s28 }
 0x1b6   : > { %p1294_p4 = pnand %p1293_p0, %p1796_p12 }
 0x1b7   : > { %p1299_p2 = por %p1298_p7, %p1297_p6 }
 0x1b8   : > { %p1295_p13 = pneg %p1294_p4 }
 0x1b9   : > { %p1301_p1 = por %p1300_p8, %p1299_p2 }
 0x1bb   : > { %p1302_p10 = pnand %p1301_p1, %p1295_p13 }
 0x1bd   : > { %1305 = shalt.err (!%p1302_p10)
}
 0x1be   : > { %s1406_s12 = smov 256   ;;  %s1407_s27 = smov 16   ;;  %v938_v27 = vld [vmem:[%s1775_s4] ss:$0 sm:$0xff] }
 0x1bf   : > { %1066 = dma.vmem_to_hbm [thread:$0]  (%p1796_p12), %s1685_s17, 1024, %s1683_s28, %s726_s15, %s1406_s12, %s1406_s12, %s1407_s27  }
 0x1c0   : > { %s353_s17 = scalar_lea.vmem [#allocation9], %s925_s30  ;;  %s951_s28 = sshll.u32 %s1388_s24, 9 }
 0x1c1   : > { %s763_s15 = sshll.u32 %s353_s17, 4  ;;  %s1720_s13 = scalar_lea.hbm %s1777_s6, %s951_s28  ;;  %s1722_s15 = int_to_ptr.vmem [resolvable:$true] %s763_s15 }
 0x1c2   : > { %s731_s30 = scalar_lea.sflag [#allocation10], %s1640_s8  ;;  %s1306_s16 = scalar_lea.vmem %s1722_s15, 512 }
 0x1c3   : > { %p1307_p3 = scmp.ne.s32.totalorder %s1722_s15, %s1306_s16  ;;  %s1408_s24 = smov [#allocation9]  }
 0x1c4   : > { %s1310_s19 = sshll.u32 %s1408_s24, 4  ;;  %s1311_s19 = int_to_ptr.vmem [resolvable:$false] %s1310_s19 }
 0x1c5   : > { %p1308_p5 = pnand %p1307_p3, %p1796_p12  ;;  %s1312_s14 = scalar_lea.vmem %s1311_s19, 1024 }
 0x1c6   : > { %p1313_p11 = scmp.lt.s32.totalorder %s1722_s15, %s1311_s19  ;;  %p1314_p0 = scmp.lt.s32.totalorder %s1312_s14, %s1306_s16 }
 0x1c7   : > { %p1309_p9 = pneg %p1308_p5 }
 0x1c8   : > { %p1315_p4 = por %p1314_p0, %p1313_p11 }
 0x1ca   : > { %p1316_p13 = pnand %p1315_p4, %p1309_p9 }
 0x276   : > { %v656_v28 = vpop.f32.mrb[0].mxu1 }
 0x277   : > { %v713_v29 = vadd.f32 %v938_v27, %v656_v28  ;;  %v658_v30 = vpop.f32.mrb[1].mxu1 }
 0x279   : > { %1184 = vtanh.f32 %v713_v29 }
 0x27a   : > { %v661_v31 = vpop.f32.mrb[2].mxu1 }
 0x27b   : > { %v714_v32 = vadd.f32 %v938_v27, %v661_v31  ;;  %v663_v33 = vpop.f32.mrb[3].mxu1 }
 0x27d   : > { %1186 = vtanh.f32 %v714_v32 }
 0x27e   : > { %v666_v34 = vpop.f32.mrb[4].mxu1 }
 0x27f   : > { %v715_v35 = vadd.f32 %v938_v27, %v666_v34  ;;  %v668_v36 = vpop.f32.mrb[5].mxu1 }
 0x281   : > { %1188 = vtanh.f32 %v715_v35 }
 0x283   : > { %v1185_v37 = vpop.eup %1184 }
 0x284   : > { %721 = vst [vmem:[%s353_s17] sm:$0xff] %v1185_v37  ;;  %v671_v38 = vpop.f32.mrb[6].mxu1 }
 0x285   : > { %v716_v39 = vadd.f32 %v938_v27, %v671_v38  ;;  %v673_v40 = vpop.f32.mrb[7].mxu1 }
 0x287   : > { %v1187_v41 = vpop.eup %1186  ;;  %1190 = vtanh.f32 %v716_v39 }
 0x288   : > { %722 = vst [vmem:[%s353_s17 + $0x8] sm:$0xff] %v1187_v41 }
 0x28b   : > { %v1189_v42 = vpop.eup %1188 }
 0x28c   : > { %723 = vst [vmem:[%s353_s17 + $0x10] sm:$0xff] %v1189_v42 }
 0x291   : > { %v1191_v43 = vpop.eup %1190 }
 0x292   : > { %724 = vst [vmem:[%s353_s17 + $0x18] sm:$0xff] %v1191_v43 }
 0x293   : > { %1319 = shalt.err (!%p1316_p13)
}
 0x294   : > { %s1320_s12 = scalar_lea.hbm %s1720_s13, 512  ;;  %s1324_s29 = scalar_lea.hbm %s1777_s6, 1024 }
 0x295   : > { %p1321_p6 = scmp.ne.s32.totalorder %s1720_s13, %s1320_s12  ;;  %p1325_p8 = scmp.lt.u32.totalorder %s1720_s13, %s1777_s6 }
 0x296   : > { %p1326_p1 = scmp.lt.u32.totalorder %s1324_s29, %s1320_s12  ;;  %p1328_p3 = scmp.lt.u32.totalorder %s1320_s12, %s1720_s13 }
 0x297   : > { %p1322_p7 = pnand %p1321_p6, %p1796_p12 }
 0x298   : > { %p1327_p10 = por %p1326_p1, %p1325_p8 }
 0x299   : > { %p1323_p2 = pneg %p1322_p7 }
 0x29a   : > { %p1329_p5 = por %p1328_p3, %p1327_p10 }
 0x29c   : > { %p1330_p9 = pnand %p1329_p5, %p1323_p2 }
 0x29e   : > { %1333 = shalt.err (!%p1330_p9)
}
 0x29f   : > { %s1409_s7 = smov 128   ;;  %s1410_s9 = smov 8  }
 0x2a0   : > { %1067 = dma.vmem_to_hbm [thread:$0]  (%p1796_p12), %s1722_s15, 512, %s1720_s13, %s731_s30, %s1409_s7, %s1409_s7, %s1410_s9  }
 0x2a1 PF: > { %s1797_s16 = sld [smem:[#allocation15_spill]]  ;;  %s778_s24 = sand.u32 1, %s1376_s21  }
 0x2a2   : > { %p1799_p0 = scmp.ge.s32.totalorder %s1396_s26, 2  ;;  %s779_s19 = scalar_lea.sflag [#allocation4], %s778_s24 }
 0x2a7   : > { %p1798_p11 = scmp.ne.s32.totalorder %s1797_s16, 0 }
 0x2a9   : > { %p1082_p4 = pnand %p1799_p0, %p1798_p11 }
 0x2ab   : > { %1367 = dma.done.wait (!%p1082_p4), %s779_s19, 1024  }
 0x2ac   : > { %1369 = vsyncadd (!%p1082_p4), %s779_s19, 4294966272  ;;  %s788_s14 = scalar_lea.sflag [#allocation10], %s778_s24 }
 0x2ad   : > { %1371 = dma.done.wait (!%p1082_p4), %s788_s14, 512  }
 0x2ae   : > { %1373 = vsyncadd (!%p1082_p4), %s788_s14, 4294966784  ;;  %s27_s26 = sadd.s32 1, %s1396_s26   ;;  %s1800_s21 = smov %s1380_s22 }
 0x2af   : > { %p24_p13 = scmp.ge.s32.totalorder %s27_s26, 4   ;;  %s1801_s22 = smov %s1384_s23 }
 0x2b0   : > { %s1802_s23 = smov %s1591_s11  ;;  %s1803_s24 = smov %s1392_s25 }
 0x2b1   : > { %s1804_s25 = smov %s1806_s18  ;;  %26 = sbr.rel (!%p24_p13) target bundleno = 9 (0x9), region = 127 }
 0x2b8   :  { %793 = vsyncpa [#allocation3], 1 }
 0x2b9   :  { %795 = vsyncpa [#allocation3 + $0x1], 1 }
 0x2ba   :  { %796 = vsyncpa [#allocation6], 1 }
 0x2bb   :  { %797 = vsyncpa [#allocation4], 1 }
 0x2bc   :  { %799 = vsyncpa [#allocation4 + $0x1], 1 }
 0x2bd   :  { %800 = vsyncpa [#allocation10], 1 }
 0x2be   :  { %802 = vsyncpa [#allocation10 + $0x1], 1 }

</bundles_post_ra>
